<compile_context>
chip_gen: v5e
topology: v5e:2x2
jax: 0.10.0
libtpu: 0.0.40
codegen_flags: <defaults>
</compile_context>

<pallas_src>
import numpy as np
import jax
import jax.numpy as jnp
from jax.experimental import pallas as pl
from jax.experimental.pallas import tpu as pltpu


def _round_up(x, m):
    return (x + m - 1) // m * m


# ----------------------------- kernel -----------------------------
def _tlsdmdcgp_kernel(z_ref, wdist_ref, gpr_ref, qmat_ref, pmat_ref,
                      wz_ref, we_ref, orow_ref, out_ref):
    """Fused batched tlsDMDc + independent-RBF-GP forward step.

    z_ref    : (TB, nzp)      query rows [x; u], zero padded to nzp lanes
    wdist_ref: (nzp, MX)      col m*nx+i = Z_train[m,:] / ls_i^2
    gpr_ref  : (2, MX)        row0 = -0.5/ls_i^2 (tiled), row1 = -0.5*||Z_m||^2/ls_i^2
    qmat_ref : (MX, MX)       block-diag: [m*nx+i, n*nx+i] = outs_i^2 * Kinv_i[m,n]
    pmat_ref : (MX, OUTW)     grouped-sum selector into the x_std lanes
    wz_ref   : (nzp, OUTW)    [[A|B]^T | [A|B]^T C^T | 0]
    we_ref   : (MX, OUTW)     [W_alpha | W_alpha C^T | 0]
    orow_ref : (2, OUTW)      row0 = [0 | y_mean | 0], row1 = [0 | 0 | outs+noise | 0]
    out_ref  : (TB, OUTW)     packed [x_next | y_next | x_std | 0-pad]
    """
    z = z_ref[...]                                        # (TB, nzp)
    s_rep = gpr_ref[0:1, :]                               # (1, MX)
    c_rep = gpr_ref[1:2, :]                               # (1, MX)
    bias = orow_ref[0:1, :]                                # (1, OUTW)
    prior = orow_ref[1:2, :]                               # (1, OUTW)

    # ---- RBF features, flat on lanes: e[b, m*nx+i] = exp(-0.5*||z_b-Z_m||^2/ls_i^2)
    zz = jnp.sum(z * z, axis=1, keepdims=True)             # (TB, 1)
    arg = (jnp.dot(z, wdist_ref[...], preferred_element_type=jnp.float32)
           + zz * s_rep + c_rep)                           # (TB, MX)
    e = jnp.exp(arg)                                       # (TB, MX)

    # ---- fused linear dynamics + GP mean correction: [x_next | y_next | 0]
    dyn = (jnp.dot(z, wz_ref[...], preferred_element_type=jnp.float32)
           + jnp.dot(e, we_ref[...], preferred_element_type=jnp.float32)
           + bias)                                         # (TB, OUTW)

    # ---- GP predictive std: q_i = e_i^T (outs_i^2 K_i^{-1}) e_i, all MXU/VPU dense
    t = jnp.dot(e, qmat_ref[...], preferred_element_type=jnp.float32)       # (TB, MX)
    q = jnp.dot(e * t, pmat_ref[...], preferred_element_type=jnp.float32)   # (TB, OUTW)
    std = jnp.sqrt(jnp.maximum(prior - q, 0.0))            # nonzero only in x_std lanes

    # packed, lane-dense, unmasked store
    out_ref[...] = dyn + std


# ----------------------- host-side packing (once per model) -----------------------
def pack_params(params):
    f32 = jnp.float32
    A = jnp.asarray(params["A"], f32)
    B = jnp.asarray(params["B"], f32)
    C = jnp.asarray(params["C"], f32)
    y_mean = jnp.asarray(params["y_mean"], f32)
    Z = jnp.asarray(params["Z_train"], f32)                 # (M, nz)
    alpha = jnp.asarray(params["alpha"], f32)               # (M, nx)
    ls = jnp.asarray(params["lengthscale"], f32)            # (nx,)
    outs = jnp.asarray(params["outputscale"], f32)          # (nx,)
    noise = jnp.asarray(params["noise"], f32)               # (nx,)
    Kinv = jnp.asarray(params["Kinv"], f32)                 # (nx, M, M)

    nx, nu = A.shape[0], B.shape[1]
    ny = C.shape[0]
    M = Z.shape[0]
    nz = nx + nu
    nzp = max(8, _round_up(nz, 8))                          # sublane/lane aligned z width
    MX = M * nx                                             # flat GP-feature lane width
    nxy = nx + ny
    outw = max(128, _round_up(2 * nx + ny, 128))            # lane-dense packed output

    ls2 = ls * ls
    inv_ls2 = 1.0 / ls2                                     # (nx,)
    ZZ = jnp.sum(Z * Z, axis=1)                             # (M,)

    # distance matmul weight: w_dist[k, m*nx+i] = Z[m,k] / ls_i^2
    w_dist = jnp.zeros((nzp, MX), f32).at[:nz, :].set(
        (Z.T[:, :, None] * inv_ls2[None, None, :]).reshape(nz, MX))
    # gp rows: s_rep[m*nx+i] = -0.5/ls_i^2 ; c_rep[m*nx+i] = -0.5*ZZ[m]/ls_i^2
    s_rep = jnp.tile(-0.5 * inv_ls2, M)
    c_rep = jnp.repeat(ZZ, nx) * jnp.tile(-0.5 * inv_ls2, M)
    gp_rows = jnp.stack([s_rep, c_rep], axis=0)             # (2, MX)

    # fused dynamics weights -> lanes [0:nx) = x_next, [nx:nx+ny) = y_next
    AB_t = jnp.concatenate([A, B], axis=1).T                # (nz, nx)
    w_zdyn = jnp.zeros((nzp, outw), f32)
    w_zdyn = w_zdyn.at[:nz, :nx].set(AB_t)
    w_zdyn = w_zdyn.at[:nz, nx:nxy].set(AB_t @ C.T)

    alpha_s = alpha * outs[None, :]                          # (M, nx)
    w_alpha = (alpha_s[:, :, None] * jnp.eye(nx, dtype=f32)[None, :, :]).reshape(MX, nx)
    w_edyn = jnp.zeros((MX, outw), f32)
    w_edyn = w_edyn.at[:, :nx].set(w_alpha)
    w_edyn = w_edyn.at[:, nx:nxy].set(w_alpha @ C.T)

    # block-diagonal quadratic-form matrix: Q[m*nx+i, n*nx+j] = d(i,j)*outs_i^2*Kinv_i[m,n]
    S = Kinv * (outs ** 2)[:, None, None]                    # (nx, M, M)
    S_t = jnp.transpose(S, (1, 0, 2))                        # (M, nx, M)
    q_mat = (S_t[:, :, :, None] * jnp.eye(nx, dtype=f32)[None, :, None, :]).reshape(MX, MX)

    # grouped-sum selector into the x_std lanes [nxy : nxy+nx)
    p_np = np.zeros((MX, outw), np.float32)
    rows = np.arange(MX)
    p_np[rows, nxy + (rows % nx)] = 1.0
    p_mat = jnp.asarray(p_np)

    # output rows: dyn bias (y_mean) and shifted prior variance
    out_rows = jnp.zeros((2, outw), f32)
    out_rows = out_rows.at[0, nx:nxy].set(y_mean)
    out_rows = out_rows.at[1, nxy:nxy + nx].set(outs + noise)

    return dict(w_dist=w_dist, gp_rows=gp_rows, q_mat=q_mat, p_mat=p_mat,
                w_zdyn=w_zdyn, w_edyn=w_edyn, out_rows=out_rows,
                nx=nx, nu=nu, ny=ny, M=M, nz=nz, nzp=nzp, MX=MX, outw=outw)


# ----------------------------- wrappers -----------------------------
def tlsdmdcgp_forward_batch(X, U, packed, tile_b=128):
    """Batched forward: X (B, nx), U (B, nu) -> (x_next, y_next, x_std)."""
    nx, nu, ny = packed["nx"], packed["nu"], packed["ny"]
    nzp, MX, outw = packed["nzp"], packed["MX"], packed["outw"]
    nz = packed["nz"]

    B = X.shape[0]
    Zq = jnp.concatenate([X.astype(jnp.float32).reshape(B, nx),
                          U.astype(jnp.float32).reshape(B, nu)], axis=1)   # (B, nz)
    Zq = jnp.pad(Zq, ((0, 0), (0, nzp - nz)))

    TB = tile_b if B >= tile_b else _round_up(max(B, 8), 8)
    Bp = _round_up(B, TB)
    if Bp != B:
        Zq = jnp.pad(Zq, ((0, Bp - B), (0, 0)))
    grid = (Bp // TB,)

    flops = int(2 * Bp * (nzp * MX + nzp * outw + 2 * MX * outw + MX * MX))
    bytes_accessed = int(4 * (Bp * nzp + Bp * outw
                              + nzp * MX + 2 * MX + MX * MX + 2 * MX * outw
                              + nzp * outw + 2 * outw))

    out = pl.pallas_call(
        _tlsdmdcgp_kernel,
        out_shape=jax.ShapeDtypeStruct((Bp, outw), jnp.float32),
        grid=grid,
        in_specs=[
            pl.BlockSpec((TB, nzp), lambda i: (i, 0)),      # z queries (tiled on batch)
            pl.BlockSpec((nzp, MX), lambda i: (0, 0)),      # w_dist
            pl.BlockSpec((2, MX), lambda i: (0, 0)),        # gp rows
            pl.BlockSpec((MX, MX), lambda i: (0, 0)),       # q_mat
            pl.BlockSpec((MX, outw), lambda i: (0, 0)),     # p_mat
            pl.BlockSpec((nzp, outw), lambda i: (0, 0)),    # w_zdyn
            pl.BlockSpec((MX, outw), lambda i: (0, 0)),     # w_edyn
            pl.BlockSpec((2, outw), lambda i: (0, 0)),      # out rows
        ],
        out_specs=pl.BlockSpec((TB, outw), lambda i: (i, 0)),
        compiler_params=pltpu.CompilerParams(
            dimension_semantics=("parallel",)),
        cost_estimate=pl.CostEstimate(
            flops=flops,
            transcendentals=int(Bp * (MX + outw)),
            bytes_accessed=bytes_accessed),
    )(Zq, packed["w_dist"], packed["gp_rows"], packed["q_mat"], packed["p_mat"],
      packed["w_zdyn"], packed["w_edyn"], packed["out_rows"])

    out = out[:B]
    nxy = nx + ny
    return out[:, :nx], out[:, nx:nxy], out[:, nxy:nxy + nx]


def tlsdmdcgp_forward(x, u, packed, return_std=False):
    """Single-query forward matching the PyTorch module semantics."""
    x_next, y_next, x_std = tlsdmdcgp_forward_batch(
        jnp.ravel(x)[None, :], jnp.ravel(u)[None, :], packed)
    if return_std:
        return x_next[0], y_next[0], x_std[0]
    return x_next[0], y_next[0]


# ------------------------- pure-JAX reference -------------------------
def reference_forward(x, u, params):
    z = jnp.concatenate([x, u])
    d = params["Z_train"] - z[None, :]                              # (M, nz)
    r2 = jnp.sum(d * d, axis=1)                                     # (M,)
    ls2 = params["lengthscale"] ** 2
    ks = params["outputscale"][None, :] * jnp.exp(-0.5 * r2[:, None] / ls2[None, :])
    x_err = jnp.sum(ks * params["alpha"], axis=0)                   # (nx,)
    q = jnp.einsum("mi,imn,ni->i", ks, params["Kinv"], ks)
    x_std = jnp.sqrt(jnp.maximum(params["outputscale"] + params["noise"] - q, 0.0))
    x_next = params["A"] @ x + params["B"] @ u + x_err
    y_next = params["C"] @ x_next + params["y_mean"]
    return x_next, y_next, x_std


# ---------------------- deterministic parameters -----------------------
def make_params(key, nx=8, nu=2, ny=32, M=16):
    ks = jax.random.split(key, 8)
    A = 0.8 * jnp.eye(nx) + 0.05 * jax.random.normal(ks[0], (nx, nx))
    B = 0.1 * jax.random.normal(ks[1], (nx, nu))
    C = jax.random.normal(ks[2], (ny, nx)) / jnp.sqrt(nx)
    y_mean = 0.1 * jax.random.normal(ks[3], (ny,))
    Z_train = jax.random.normal(ks[4], (M, nx + nu))                # GP training inputs [x;u]
    lengthscale = 1.0 + 0.5 * jax.random.uniform(ks[5], (nx,))
    outputscale = 0.5 + 0.5 * jax.random.uniform(ks[6], (nx,))
    noise = jnp.full((nx,), 0.01)                                   # min_sigma**2
    targets = 0.1 * jax.random.normal(ks[7], (M, nx))               # residual training targets
    # Per-GP training kernel matrices, their inverses, and alpha = K^{-1} y.
    d2 = jnp.sum((Z_train[:, None, :] - Z_train[None, :, :]) ** 2, axis=-1)
    K = (outputscale[:, None, None]
         * jnp.exp(-0.5 * d2[None] / lengthscale[:, None, None] ** 2)
         + noise[:, None, None] * jnp.eye(M)[None])
    Kinv = jnp.linalg.inv(K)                                        # (nx, M, M)
    alpha = jnp.einsum("imn,ni->mi", Kinv, targets)                 # (M, nx)
    return dict(A=A, B=B, C=C, y_mean=y_mean, Z_train=Z_train, alpha=alpha,
                lengthscale=lengthscale, outputscale=outputscale, noise=noise, Kinv=Kinv)


if __name__ == "__main__":
    nx, nu, ny, M = 8, 2, 32, 16
    Bq = 256                                                        # batched MPC-style queries
    key = jax.random.PRNGKey(0)
    kp, kx, ku = jax.random.split(key, 3)
    params = make_params(kp, nx=nx, nu=nu, ny=ny, M=M)
    packed = pack_params(params)

    X = jax.random.normal(kx, (Bq, nx), dtype=jnp.float32)
    U = jax.random.normal(ku, (Bq, nu), dtype=jnp.float32)

    # batched forward (the performance path)
    xb, yb, sb = tlsdmdcgp_forward_batch(X, U, packed)
    jax.block_until_ready((xb, yb, sb))

    # single-query forward (module semantics)
    x1, y1, s1 = tlsdmdcgp_forward(X[0], U[0], packed, return_std=True)
    jax.block_until_ready((x1, y1, s1))

    xr, yr, sr = jax.vmap(reference_forward, in_axes=(0, 0, None))(X, U, params)
    assert np.allclose(np.asarray(xb), np.asarray(xr), atol=1e-3, rtol=1e-3)
    assert np.allclose(np.asarray(yb), np.asarray(yr), atol=1e-3, rtol=1e-3)
    assert np.allclose(np.asarray(sb), np.asarray(sr), atol=1e-3, rtol=1e-3)
    assert np.allclose(np.asarray(x1), np.asarray(xr[0]), atol=1e-3, rtol=1e-3)
    assert np.allclose(np.asarray(y1), np.asarray(yr[0]), atol=1e-3, rtol=1e-3)
    assert np.allclose(np.asarray(s1), np.asarray(sr[0]), atol=1e-3, rtol=1e-3)
    print("KERNEL_OK")
</pallas_src>

<mosaic_0001>
module attributes {stable_mosaic.version = 11 : i64} {
  func.func @_tlsdmdcgp_kernel(%arg0: i32, %arg1: memref<128x16xf32, #tpu.memory_space<vmem>>, %arg2: memref<16x128xf32, #tpu.memory_space<vmem>>, %arg3: memref<2x128xf32, #tpu.memory_space<vmem>>, %arg4: memref<128x128xf32, #tpu.memory_space<vmem>>, %arg5: memref<128x128xf32, #tpu.memory_space<vmem>>, %arg6: memref<16x128xf32, #tpu.memory_space<vmem>>, %arg7: memref<128x128xf32, #tpu.memory_space<vmem>>, %arg8: memref<2x128xf32, #tpu.memory_space<vmem>>, %arg9: memref<128x128xf32, #tpu.memory_space<vmem>>) attributes {dimension_semantics = [#tpu.dimension_semantics<parallel>], iteration_bounds = array<i64: 2>, scalar_prefetch = 0 : i64, scratch_operands = 0 : i64, tpu.core_type = #tpu.core_type<tc>, window_params = [{transform_indices = @transform_0, window_bounds = array<i64: 128, 16>}, {pipeline_mode = #tpu.pipeline_mode<synchronous>, transform_indices = @transform_1, window_bounds = array<i64: 16, 128>}, {pipeline_mode = #tpu.pipeline_mode<synchronous>, transform_indices = @transform_2, window_bounds = array<i64: 2, 128>}, {pipeline_mode = #tpu.pipeline_mode<synchronous>, transform_indices = @transform_3, window_bounds = array<i64: 128, 128>}, {pipeline_mode = #tpu.pipeline_mode<synchronous>, transform_indices = @transform_4, window_bounds = array<i64: 128, 128>}, {pipeline_mode = #tpu.pipeline_mode<synchronous>, transform_indices = @transform_5, window_bounds = array<i64: 16, 128>}, {pipeline_mode = #tpu.pipeline_mode<synchronous>, transform_indices = @transform_6, window_bounds = array<i64: 128, 128>}, {pipeline_mode = #tpu.pipeline_mode<synchronous>, transform_indices = @transform_7, window_bounds = array<i64: 2, 128>}, {transform_indices = @transform_8, window_bounds = array<i64: 128, 128>}]} {
    %c0 = arith.constant 0 : index
    %c0_0 = arith.constant 0 : index
    %0 = vector.load %arg1[%c0, %c0_0] : memref<128x16xf32, #tpu.memory_space<vmem>>, vector<128x16xf32>
    %c0_1 = arith.constant 0 : index
    %c0_2 = arith.constant 0 : index
    %1 = vector.load %arg3[%c0_1, %c0_2] : memref<2x128xf32, #tpu.memory_space<vmem>>, vector<1x128xf32>
    %c1 = arith.constant 1 : index
    %c0_3 = arith.constant 0 : index
    %2 = vector.load %arg3[%c1, %c0_3] : memref<2x128xf32, #tpu.memory_space<vmem>>, vector<1x128xf32>
    %c0_4 = arith.constant 0 : index
    %c0_5 = arith.constant 0 : index
    %3 = vector.load %arg8[%c0_4, %c0_5] : memref<2x128xf32, #tpu.memory_space<vmem>>, vector<1x128xf32>
    %c1_6 = arith.constant 1 : index
    %c0_7 = arith.constant 0 : index
    %4 = vector.load %arg8[%c1_6, %c0_7] : memref<2x128xf32, #tpu.memory_space<vmem>>, vector<1x128xf32>
    %5 = arith.mulf %0, %0 : vector<128x16xf32>
    %cst = arith.constant dense<0.000000e+00> : vector<128xf32>
    %6 = vector.multi_reduction <add>, %5, %cst [1] : vector<128x16xf32> to vector<128xf32>
    %7 = vector.shape_cast %6 : vector<128xf32> to vector<128x1xf32>
    %c0_8 = arith.constant 0 : index
    %c0_9 = arith.constant 0 : index
    %8 = vector.load %arg2[%c0_8, %c0_9] : memref<16x128xf32, #tpu.memory_space<vmem>>, vector<16x128xf32>
    %cst_10 = arith.constant dense<0.000000e+00> : vector<128x128xf32>
    %9 = tpu.matmul %0, %8, %cst_10 {dimension_numbers = #tpu.dot_dimension_numbers<[1], [0], [0], [1], [0, 0, 1, 1], [], []>} : vector<128x16xf32>, vector<16x128xf32>, vector<128x128xf32> -> vector<128x128xf32>
    %10 = vector.broadcast %7 : vector<128x1xf32> to vector<128x128xf32>
    %11 = vector.broadcast %1 : vector<1x128xf32> to vector<128x128xf32>
    %12 = arith.mulf %10, %11 : vector<128x128xf32>
    %13 = arith.addf %9, %12 : vector<128x128xf32>
    %14 = vector.broadcast %2 : vector<1x128xf32> to vector<128x128xf32>
    %15 = arith.addf %13, %14 : vector<128x128xf32>
    %16 = math.exp %15 : vector<128x128xf32>
    %c0_11 = arith.constant 0 : index
    %c0_12 = arith.constant 0 : index
    %17 = vector.load %arg6[%c0_11, %c0_12] : memref<16x128xf32, #tpu.memory_space<vmem>>, vector<16x128xf32>
    %cst_13 = arith.constant dense<0.000000e+00> : vector<128x128xf32>
    %18 = tpu.matmul %0, %17, %cst_13 {dimension_numbers = #tpu.dot_dimension_numbers<[1], [0], [0], [1], [0, 0, 1, 1], [], []>} : vector<128x16xf32>, vector<16x128xf32>, vector<128x128xf32> -> vector<128x128xf32>
    %c0_14 = arith.constant 0 : index
    %c0_15 = arith.constant 0 : index
    %19 = vector.load %arg7[%c0_14, %c0_15] : memref<128x128xf32, #tpu.memory_space<vmem>>, vector<128x128xf32>
    %cst_16 = arith.constant dense<0.000000e+00> : vector<128x128xf32>
    %20 = tpu.matmul %16, %19, %cst_16 {dimension_numbers = #tpu.dot_dimension_numbers<[1], [0], [0], [1], [0, 0, 1, 1], [], []>} : vector<128x128xf32>, vector<128x128xf32>, vector<128x128xf32> -> vector<128x128xf32>
    %21 = arith.addf %18, %20 : vector<128x128xf32>
    %22 = vector.broadcast %3 : vector<1x128xf32> to vector<128x128xf32>
    %23 = arith.addf %21, %22 : vector<128x128xf32>
    %c0_17 = arith.constant 0 : index
    %c0_18 = arith.constant 0 : index
    %24 = vector.load %arg4[%c0_17, %c0_18] : memref<128x128xf32, #tpu.memory_space<vmem>>, vector<128x128xf32>
    %cst_19 = arith.constant dense<0.000000e+00> : vector<128x128xf32>
    %25 = tpu.matmul %16, %24, %cst_19 {dimension_numbers = #tpu.dot_dimension_numbers<[1], [0], [0], [1], [0, 0, 1, 1], [], []>} : vector<128x128xf32>, vector<128x128xf32>, vector<128x128xf32> -> vector<128x128xf32>
    %26 = arith.mulf %16, %25 : vector<128x128xf32>
    %c0_20 = arith.constant 0 : index
    %c0_21 = arith.constant 0 : index
    %27 = vector.load %arg5[%c0_20, %c0_21] : memref<128x128xf32, #tpu.memory_space<vmem>>, vector<128x128xf32>
    %cst_22 = arith.constant dense<0.000000e+00> : vector<128x128xf32>
    %28 = tpu.matmul %26, %27, %cst_22 {dimension_numbers = #tpu.dot_dimension_numbers<[1], [0], [0], [1], [0, 0, 1, 1], [], []>} : vector<128x128xf32>, vector<128x128xf32>, vector<128x128xf32> -> vector<128x128xf32>
    %29 = vector.broadcast %4 : vector<1x128xf32> to vector<128x128xf32>
    %30 = arith.subf %29, %28 : vector<128x128xf32>
    %cst_23 = arith.constant 0.000000e+00 : f32
    %31 = vector.broadcast %cst_23 : f32 to vector<128x128xf32>
    %32 = arith.maximumf %30, %31 : vector<128x128xf32>
    %33 = math.sqrt %32 : vector<128x128xf32>
    %34 = arith.addf %23, %33 : vector<128x128xf32>
    %c0_24 = arith.constant 0 : index
    %c0_25 = arith.constant 0 : index
    %35 = vector.load %arg9[%c0_24, %c0_25] : memref<128x128xf32, #tpu.memory_space<vmem>>, vector<128x128xf32>
    tpu.vector_store %arg9[%c0_24, %c0_25], %34 {strides = array<i32>} : memref<128x128xf32, #tpu.memory_space<vmem>>, vector<128x128xf32>,
    return
  }
  func.func @transform_0(%arg0: i32) -> (i32, i32) {
    %c0_i32 = arith.constant 0 : i32
    %c0_i32_0 = arith.constant 0 : i32
    return %arg0, %c0_i32 : i32, i32
  }
  func.func @transform_1(%arg0: i32) -> (i32, i32) {
    %c0_i32 = arith.constant 0 : i32
    %c0_i32_0 = arith.constant 0 : i32
    %c0_i32_1 = arith.constant 0 : i32
    return %c0_i32, %c0_i32_0 : i32, i32
  }
  func.func @transform_2(%arg0: i32) -> (i32, i32) {
    %c0_i32 = arith.constant 0 : i32
    %c0_i32_0 = arith.constant 0 : i32
    %c0_i32_1 = arith.constant 0 : i32
    return %c0_i32, %c0_i32_0 : i32, i32
  }
  func.func @transform_3(%arg0: i32) -> (i32, i32) {
    %c0_i32 = arith.constant 0 : i32
    %c0_i32_0 = arith.constant 0 : i32
    %c0_i32_1 = arith.constant 0 : i32
    return %c0_i32, %c0_i32_0 : i32, i32
  }
  func.func @transform_4(%arg0: i32) -> (i32, i32) {
    %c0_i32 = arith.constant 0 : i32
    %c0_i32_0 = arith.constant 0 : i32
    %c0_i32_1 = arith.constant 0 : i32
    return %c0_i32, %c0_i32_0 : i32, i32
  }
  func.func @transform_5(%arg0: i32) -> (i32, i32) {
    %c0_i32 = arith.constant 0 : i32
    %c0_i32_0 = arith.constant 0 : i32
    %c0_i32_1 = arith.constant 0 : i32
    return %c0_i32, %c0_i32_0 : i32, i32
  }
  func.func @transform_6(%arg0: i32) -> (i32, i32) {
    %c0_i32 = arith.constant 0 : i32
    %c0_i32_0 = arith.constant 0 : i32
    %c0_i32_1 = arith.constant 0 : i32
    return %c0_i32, %c0_i32_0 : i32, i32
  }
  func.func @transform_7(%arg0: i32) -> (i32, i32) {
    %c0_i32 = arith.constant 0 : i32
    %c0_i32_0 = arith.constant 0 : i32
    %c0_i32_1 = arith.constant 0 : i32
    return %c0_i32, %c0_i32_0 : i32, i32
  }
  func.func @transform_8(%arg0: i32) -> (i32, i32) {
    %c0_i32 = arith.constant 0 : i32
    %c0_i32_0 = arith.constant 0 : i32
    return %arg0, %c0_i32 : i32, i32
  }
}

</mosaic_0001>

<bundles_post_ra>
// kernel: tpu_custom_call.1
= control target key start
LH: loop header
LB: loop body
LE: loop exit
PB: predicated region body
PF: predicated region fallthrough
CT: control target
= control target key end

     0   :  { %13 = vsyncpa [#allocation3], 0  ;;  %s2259_s0 = inlined_call_operand.vmem [shape: f32[256,16], index: 0, kind: input, shape index: {}]   ;;  %s2260_s1 = inlined_call_operand.vmem [shape: f32[16,128], index: 1, kind: input, shape index: {}]   ;;  %s2261_s2 = inlined_call_operand.hbm [shape: f32[2,128], index: 2, kind: input, shape index: {}]   ;;  %s2262_s3 = inlined_call_operand.vmem [shape: f32[128,128], index: 3, kind: input, shape index: {}]   ;;  %s2263_s4 = inlined_call_operand.vmem [shape: f32[128,128], index: 4, kind: input, shape index: {}]   ;;  %s2264_s5 = inlined_call_operand.vmem [shape: f32[16,128], index: 5, kind: input, shape index: {}]   ;;  %s2265_s6 = inlined_call_operand.hbm [shape: f32[128,128], index: 6, kind: input, shape index: {}]   ;;  %s2266_s7 = inlined_call_operand.vmem [shape: f32[2,128], index: 7, kind: input, shape index: {}]   ;;  %s2267_s8 = inlined_call_operand.hbm [shape: f32[256,128], index: 8, kind: output, shape index: {}]  }
   0x1   :  { %14 = vsyncpa [#allocation6], 0 }
   0x2   :  { %15 = vsyncpa [#allocation4], 0 }
   0x3   :  { %17 = vsyncpa [#allocation4 + $0x1], 0  ;;  %s1675_s27 = smov 0   ;;  %s1677_s28 = smov 0  }
   0x4   :  { %s1679_s29 = smov 0   ;;  %s1681_s30 = smov 0  }
   0x5 LB: > { %s1696_s9 = sadd.s32 4294967295, %s1622_s30   ;;  %s1305_s10 = sadd.s32 4294967294, %s1622_s30   ;;  %s1622_s30 = sphi %s1681_s30, %s2274_s30   ;;  %s1618_s29 = sphi %s1679_s29, %s2273_s29   ;;  %s1614_s28 = sphi %s1677_s28, %s2272_s28   ;;  %s1610_s27 = sphi %s1675_s27, %s2271_s27  }
   0x6   : > { %s1700_s11 = sadd.s32 1, %s1622_s30   ;;  %s203_s12 = sadd.s32 1, %s1618_s29 }
   0x7   : > { %s200_s13 = ssub.s32 %s1622_s30, %s1700_s11  ;;  %p213_p0 = scmp.ne.s32.totalorder %s1618_s29, %s1614_s28 }
   0x8   : > { %p201_p1 = scmp.eq.s32.totalorder %s200_s13, 0  ;;  %p214_p2 = scmp.eq.s32.totalorder %s1696_s9, 1 }
   0x9   : > { %p219_p3 = scmp.ne.s32.totalorder %s1614_s28, %s1610_s27  ;;  %p220_p4 = scmp.eq.s32.totalorder %s1305_s10, 1 }
   0xa   : > { %s1711_s14 = scalar_select %p201_p1, %s1618_s29, %s203_s12  }
   0xb   : > { %p1713_p5 = por %p214_p2, %p213_p0  ;;  %p1717_p6 = por %p220_p4, %p219_p3 }
   0xc   : > { %p1306_p7 = scmp.ge.s32.totalorder %s1622_s30, 1  ;;  %p227_p8 = scmp.lt.s32.totalorder %s1622_s30, 3 }
   0xd   : > { %p1381_p9 = scmp.eq.s32.totalorder %s1696_s9, 0  ;;  %s242_s20 = sshll.u32 %s2261_s2, 4  ;;  %s243_s20 = int_to_ptr.hbm [resolvable:$true] %s242_s20 }
   0xe   : > { %p1724_p10 = pnand %p1306_p7, %p227_p8  ;;  %s1624_s21 = smov [#allocation2]  }
   0xf   : > { %s244_s22 = sshll.u32 %s1624_s21, 4  ;;  %s262_s25 = sshll.u32 %s2265_s6, 4  ;;  %s245_s22 = int_to_ptr.vmem [resolvable:$true] %s244_s22  ;;  %s263_s25 = int_to_ptr.hbm [resolvable:$true] %s262_s25 }
  0x10   : > { %p1370_p11 = pneg %p1724_p10  ;;  %s1625_s26 = smov [#allocation5]  }
  0x11   : > { %s264_s10 = sshll.u32 %s1625_s26, 4  ;;  %s1626_s12 = smov 128   ;;  %s265_s10 = int_to_ptr.vmem [resolvable:$true] %s264_s10 }
  0x12   : > { %p1371_p12 = pnand %p1381_p9, %p1370_p11  ;;  %s1627_s13 = smov 8  }
  0x13   : > { %292 = sbr.rel (%p1724_p10) target bundleno = 584 (0x248), region = 52 }
  0x14   : > { %1373 = dma.hbm_to_vmem [thread:$0]  (!%p1371_p12), %s243_s20, 32, %s245_s22, [#allocation3]  }
  0x15   : > { %1376 = dma.hbm_to_vmem [thread:$0]  (!%p1371_p12), %s263_s25, 2048, %s265_s10, [#allocation6], %s1626_s12, %s1626_s12, %s1627_s13  }
  0x18   : > { %1597 = dma.done.wait (%p1381_p9), [#allocation3], 32  }
  0x19   : > { %1599 = vsyncadd (%p1381_p9), [#allocation3], 4294967264 }
  0x1a   : > { %1601 = dma.done.wait (%p1381_p9), [#allocation6], 2048  }
  0x1b   : > { %1603 = vsyncadd (%p1381_p9), [#allocation6], 4294965248  ;;  %s1314_s18 = sshll.u32 %s1696_s9, 4  ;;  %v425_v0 = vld [vmem:[%s2260_s1 + $0x8] sm:$0xff]  ;;  %v424_v1 = vld [vmem:[%s2260_s1] sm:$0xff]  ;;  %vm375_vm0 = vcmask 130048  }
  0x1c   : > { %p333_p13 = scmp.lt.s32.totalorder %s1314_s18, 31  ;;  %505 = vmatpush.msra.mxu0 %v425_v0  ;;  %1354 = vmatpush.msra.mxu1 %v425_v0  ;;  %v622_v19 = vld [vmem:[#allocation5 + $0x78] sm:$0xff]  ;;  %v621_v21 = vld [vmem:[#allocation5 + $0x70] sm:$0xff]  ;;  %v620_v27 = vld [vmem:[#allocation5 + $0x68] sm:$0xff]  ;;  %s1353_s24 = sshll.u32 %s1696_s9, 7 }
  0x1d   : > { %1355 = vmatpush.msra.mxu2 %v425_v0  ;;  %1356 = vmatpush.msra.mxu3 %v425_v0  ;;  %v785_v20 = vld [vmem:[%s2262_s3 + $0x78] sm:$0xff]  ;;  %v784_v22 = vld [vmem:[%s2262_s3 + $0x70] sm:$0xff]  ;;  %v783_v30 = vld [vmem:[%s2262_s3 + $0x68] sm:$0xff]  ;;  %s1217_s10 = scalar_lea.hbm %s2267_s8, %s1353_s24 }
  0x1e   : > { %s2276_s18 = smov (!%p333_p13, %s1314_s18), 31  ;;  %506 = vmatpush.msra.mxu0 %v424_v1  ;;  %1357 = vmatpush.msra.mxu1 %v424_v1  ;;  %v619_v33 = vld [vmem:[#allocation5 + $0x60] sm:$0xff]  ;;  %v618_v38 = vld [vmem:[#allocation5 + $0x58] sm:$0xff]  ;;  %v617_v43 = vld [vmem:[#allocation5 + $0x50] sm:$0xff]  ;;  %s1220_s13 = sshll.u32 %s1217_s10, 4  ;;  %s1221_s13 = int_to_ptr.hbm [resolvable:$true] %s1220_s13 }
  0x1f   : > { %s1315_s19 = sshll.u32 %s2276_s18, 3  ;;  %1358 = vmatpush.msra.mxu2 %v424_v1  ;;  %1359 = vmatpush.msra.mxu3 %v424_v1  ;;  %v782_v36 = vld [vmem:[%s2262_s3 + $0x60] sm:$0xff]  ;;  %v781_v39 = vld [vmem:[%s2262_s3 + $0x58] sm:$0xff]  ;;  %v780_v45 = vld [vmem:[%s2262_s3 + $0x50] sm:$0xff] }
  0x20   : > { %s1752_s21 = scalar_lea.vmem %s2259_s0, %s1315_s19  ;;  %623 = vmatpush.msrb.mxu1 %v622_v19  ;;  %v616_v47 = vld [vmem:[#allocation5 + $0x48] sm:$0xff]  ;;  %v615_v51 = vld [vmem:[#allocation5 + $0x40] sm:$0xff]  ;;  %v614_v0 = vld [vmem:[#allocation5 + $0x38] sm:$0xff]  ;;  %s329_s19 = sand.u32 1, %s1614_s28  }
  0x21   : > { %v1761_v2 = vld [vmem:[%s1752_s21] sm:$0xff]  ;;  %v1766_v4 = vld [vmem:[%s1752_s21 + $0x10] sm:$0xff]  ;;  %v1779_v9 = vld [vmem:[%s1752_s21 + $0x8] sm:$0xff]  ;;  %786 = vmatpush.msrb.mxu3 %v785_v20  ;;  %s1313_s22 = sshll.u32 %s329_s19, 7  ;;  %s1206_s9 = scalar_lea.sflag [#allocation4], %s329_s19 }
  0x22   : > { %v359_v3 = vmul.f32 %v1761_v2, %v1761_v2  ;;  %v361_v5 = vmul.f32 %v1766_v4, %v1766_v4  ;;  %v1771_v6 = vld [vmem:[%s1752_s21 + $0x20] sm:$0xff]  ;;  %1316 = vmatmul.msk.f32.vlgmr.msra.gmra.mxu0 %vm375_vm0, %v1761_v2  ;;  %v360_v11 = vmul.f32 %v1779_v9, %v1779_v9  ;;  %v1785_v12 = vld [vmem:[%s1752_s21 + $0x18] sm:$0xff]  ;;  %v1791_v14 = vld [vmem:[%s1752_s21 + $0x48] sm:$0xff]  ;;  %624 = vmatpush.msrb.mxu1 %v621_v21  ;;  %s2152_s23 = scalar_lea.vmem [#allocation7], %s1313_s22  ;;  %s1572_s22 = scalar_lea.hbm %s2267_s8, 256 }
  0x23   : > { %v363_v8 = vmul.f32 %v1771_v6, %v1771_v6  ;;  %1320 = vmatmul.msk.f32.vlgmr.msra.gmra.mxu1 %vm375_vm0, %v1771_v6  ;;  %v362_v15 = vmul.f32 %v1785_v12, %v1785_v12  ;;  %v1796_v16 = vld [vmem:[%s1752_s21 + $0x28] sm:$0xff]  ;;  %1325 = vmatmul.msk.f32.vlgmr.msra.gmra.mxu2 %vm375_vm0, %v1791_v14  ;;  %v1803_v18 = vld [vmem:[%s1752_s21 + $0x70] sm:$0xff]  ;;  %v1822_v28 = vld [vmem:[%s1752_s21 + $0x38] sm:$0xff]  ;;  %v368_v46 = vmul.f32 %v1791_v14, %v1791_v14  ;;  %s1218_s12 = sshll.u32 %s2152_s23, 4  ;;  %s1219_s12 = int_to_ptr.vmem [resolvable:$true] %s1218_s12 }
  0x24   : > { %v376_v7 = vsel %vm375_vm0, %v359_v3, 0.0  ;;  %v382_v10 = vsel %vm375_vm0, %v361_v5, 0.0  ;;  %v364_v17 = vmul.f32 %v1796_v16, %v1796_v16  ;;  %1330 = vmatmul.msk.f32.vlgmr.msra.gmra.mxu3 %vm375_vm0, %v1803_v18  ;;  %v379_v23 = vsel %vm375_vm0, %v360_v11, 0.0  ;;  %v1816_v25 = vld [vmem:[%s1752_s21 + $0x30] sm:$0xff]  ;;  %v1835_v32 = vld [vmem:[%s1752_s21 + $0x78] sm:$0xff]  ;;  %v1838_v34 = vld [vmem:[%s1752_s21 + $0x40] sm:$0xff]  ;;  %625 = vmatpush.msrb.mxu1 %v620_v27 }
  0x25   : > { %377 = vadd.xlane.f32.xlu0 %v376_v7  ;;  %383 = vadd.xlane.f32.xlu1 %v382_v10  ;;  %v388_v13 = vsel %vm375_vm0, %v363_v8, 0.0  ;;  %v385_v24 = vsel %vm375_vm0, %v362_v15, 0.0  ;;  %v1825_v29 = vld [vmem:[%s1752_s21 + $0x50] sm:$0xff]  ;;  %v365_v31 = vmul.f32 %v1816_v25, %v1816_v25  ;;  %v366_v35 = vmul.f32 %v1822_v28, %v1822_v28  ;;  %v1860_v44 = vld [vmem:[%s1752_s21 + $0x58] sm:$0xff]  ;;  %v779_v49 = vld [vmem:[%s2262_s3 + $0x48] sm:$0xff] }
  0x26   : > { %389 = vadd.xlane.f32.xlu2 %v388_v13  ;;  %v391_v26 = vsel %vm375_vm0, %v364_v17, 0.0  ;;  %787 = vmatpush.msrb.mxu3 %v784_v22  ;;  %v367_v37 = vmul.f32 %v1838_v34, %v1838_v34  ;;  %v369_v48 = vmul.f32 %v1825_v29, %v1825_v29  ;;  %v370_v50 = vmul.f32 %v1860_v44, %v1860_v44  ;;  %v778_v52 = vld [vmem:[%s2262_s3 + $0x40] sm:$0xff]  ;;  %v1892_v57 = vld [vmem:[%s1752_s21 + $0x68] sm:$0xff]  ;;  %v777_v1 = vld [vmem:[%s2262_s3 + $0x38] sm:$0xff] }
  0x27   : > { %626 = vmatpush.msrb.mxu1 %v619_v33  ;;  %v394_v40 = vsel %vm375_vm0, %v365_v31, 0.0  ;;  %v397_v41 = vsel %vm375_vm0, %v366_v35, 0.0  ;;  %v403_v53 = vsel %vm375_vm0, %v368_v46, 0.0  ;;  %v1887_v56 = vld [vmem:[%s1752_s21 + $0x60] sm:$0xff]  ;;  %v372_v59 = vmul.f32 %v1892_v57, %v1892_v57  ;;  %v613_v3 = vld [vmem:[#allocation5 + $0x30] sm:$0xff]  ;;  %v612_v8 = vld [vmem:[#allocation5 + $0x28] sm:$0xff] }
  0x28   : > { %788 = vmatpush.msrb.mxu3 %v783_v30  ;;  %v400_v42 = vsel %vm375_vm0, %v367_v37, 0.0  ;;  %v406_v54 = vsel %vm375_vm0, %v369_v48, 0.0  ;;  %v409_v55 = vsel %vm375_vm0, %v370_v50, 0.0  ;;  %v371_v58 = vmul.f32 %v1887_v56, %v1887_v56  ;;  %v776_v5 = vld [vmem:[%s2262_s3 + $0x30] sm:$0xff]  ;;  %v775_v10 = vld [vmem:[%s2262_s3 + $0x28] sm:$0xff]  ;;  %v774_v17 = vld [vmem:[%s2262_s3 + $0x20] sm:$0xff] }
  0x29   : > { %627 = vmatpush.msrb.mxu1 %v618_v38  ;;  %v373_v60 = vmul.f32 %v1803_v18, %v1803_v18  ;;  %v415_v62 = vsel %vm375_vm0, %v372_v59, 0.0  ;;  %v374_v7 = vmul.f32 %v1835_v32, %v1835_v32  ;;  %v611_v13 = vld [vmem:[#allocation5 + $0x20] sm:$0xff]  ;;  %v610_v19 = vld [vmem:[#allocation5 + $0x18] sm:$0xff]  ;;  %v609_v22 = vld [vmem:[#allocation5 + $0x10] sm:$0xff]  ;;  %s1566_s21 = sshra.s32 %s1221_s13, 4  ;;  %s1567_s21 = int_to_ptr.hbm [resolvable:$true] %s1566_s21 }
  0x2a   : > { %1317 = vmatmul.msk.f32.gmra.mxu0 %vm375_vm0, %v1779_v9  ;;  %789 = vmatpush.msrb.mxu3 %v782_v36  ;;  %v412_v61 = vsel %vm375_vm0, %v371_v58, 0.0  ;;  %v606_v15 = vld [vmem:[%s2264_s5 + $0x8] sm:$0xff]  ;;  %v605_v20 = vld [vmem:[%s2264_s5] sm:$0xff]  ;;  %v773_v21 = vld [vmem:[%s2262_s3 + $0x18] sm:$0xff]  ;;  %s1568_s18 = scalar_lea.hbm %s1567_s21, 128  ;;  %p1573_p3 = scmp.lt.s32.totalorder %s1567_s21, %s2267_s8 }
  0x2b   : > { %1321 = vmatmul.msk.f32.gmra.mxu1 %vm375_vm0, %v1796_v16  ;;  %1326 = vmatmul.msk.f32.gmra.mxu2 %vm375_vm0, %v1825_v29  ;;  %v418_v63 = vsel %vm375_vm0, %v373_v60, 0.0  ;;  %v421_v11 = vsel %vm375_vm0, %v374_v7, 0.0  ;;  %v607_v27 = vld [vmem:[#allocation5] sm:$0xff]  ;;  %v1948_v31 = vld [vmem:[#allocation2] ss:$0 sm:$0xff]  ;;  %p1569_p0 = scmp.ne.s32.totalorder %s1567_s21, %s1568_s18  ;;  %p1574_p4 = scmp.lt.s32.totalorder %s1572_s22, %s1568_s18 }
  0x2c   : > { %1331 = vmatmul.msk.f32.gmra.mxu3 %vm375_vm0, %v1835_v32  ;;  %628 = vmatpush.msrb.mxu1 %v617_v43  ;;  %v770_v30 = vld [vmem:[%s2262_s3] sm:$0xff] }
  0x2d   : > { %380 = vadd.xlane.f32.xlu0 %v379_v23  ;;  %386 = vadd.xlane.f32.xlu1 %v385_v24  ;;  %v772_v23 = vld [vmem:[%s2262_s3 + $0x10] sm:$0xff]  ;;  %v1951_v35 = vld [vmem:[#allocation2 + $0x1] ss:$0 sm:$0xff]  ;;  %p1570_p1 = pnand %p1569_p0, %p1713_p5  ;;  %p1575_p7 = por %p1574_p4, %p1573_p3 }
  0x2e   : > { %392 = vadd.xlane.f32.xlu2 %v391_v26  ;;  %790 = vmatpush.msrb.mxu3 %v781_v39  ;;  %v608_v24 = vld [vmem:[#allocation5 + $0x8] sm:$0xff] }
  0x2f   : > { %629 = vmatpush.msrb.mxu1 %v616_v47  ;;  %702 = vmatpush.msrb.mxu2 %v606_v15  ;;  %v771_v26 = vld [vmem:[%s2262_s3 + $0x8] sm:$0xff]  ;;  %p1571_p2 = pneg %p1570_p1 }
  0x30   : > { %791 = vmatpush.msrb.mxu3 %v780_v45 }
  0x31   : > { %630 = vmatpush.msrb.mxu1 %v615_v51  ;;  %703 = vmatpush.msrb.mxu2 %v605_v20  ;;  %p1576_p8 = pnand %p1575_p7, %p1571_p2 }
  0x32   : > { %1318 = vmatmul.msk.f32.gmra.mxu0 %vm375_vm0, %v1766_v4  ;;  %792 = vmatpush.msrb.mxu3 %v779_v49 }
  0x33   : > { %1322 = vmatmul.msk.f32.gmra.mxu1 %vm375_vm0, %v1816_v25  ;;  %1327 = vmatmul.msk.f32.gmra.mxu2 %vm375_vm0, %v1860_v44 }
  0x34   : > { %793 = vmatpush.msrb.mxu3 %v778_v52  ;;  %631 = vmatpush.msrb.mxu1 %v614_v0 }
  0x35   : > { %395 = vadd.xlane.f32.xlu0 %v394_v40  ;;  %398 = vadd.xlane.f32.xlu1 %v397_v41 }
  0x36   : > { %401 = vadd.xlane.f32.xlu2 %v400_v42  ;;  %794 = vmatpush.msrb.mxu3 %v777_v1 }
  0x37   : > { %632 = vmatpush.msrb.mxu1 %v613_v3 }
  0x38   : > { %795 = vmatpush.msrb.mxu3 %v776_v5 }
  0x39   : > { %633 = vmatpush.msrb.mxu1 %v612_v8 }
  0x3a   : > { %1319 = vmatmul.msk.f32.gmra.mxu0 %vm375_vm0, %v1785_v12  ;;  %796 = vmatpush.msrb.mxu3 %v775_v10 }
  0x3b   : > { %1323 = vmatmul.msk.f32.gmra.mxu1 %vm375_vm0, %v1822_v28  ;;  %1328 = vmatmul.msk.f32.gmra.mxu2 %vm375_vm0, %v1887_v56 }
  0x3c   : > { %634 = vmatpush.msrb.mxu1 %v611_v13  ;;  %797 = vmatpush.msrb.mxu3 %v774_v17 }
  0x3d   : > { %404 = vadd.xlane.f32.xlu0 %v403_v53  ;;  %407 = vadd.xlane.f32.xlu1 %v406_v54 }
  0x3e   : > { %410 = vadd.xlane.f32.xlu2 %v409_v55  ;;  %635 = vmatpush.msrb.mxu1 %v610_v19 }
  0x3f   : > { %798 = vmatpush.msrb.mxu3 %v773_v21 }
  0x40   : > { %636 = vmatpush.msrb.mxu1 %v609_v22 }
  0x41   : > { %799 = vmatpush.msrb.mxu3 %v772_v23 }
  0x42   : > { %637 = vmatpush.msrb.mxu1 %v608_v24 }
  0x43   : > { %1324 = vmatmul.msk.f32.gmra.mxu1 %vm375_vm0, %v1838_v34  ;;  %1329 = vmatmul.msk.f32.gmra.mxu2 %vm375_vm0, %v1892_v57 }
  0x44   : > { %800 = vmatpush.msrb.mxu3 %v771_v26  ;;  %638 = vmatpush.msrb.mxu1 %v607_v27 }
  0x45   : > { %413 = vadd.xlane.f32.xlu0 %v412_v61  ;;  %416 = vadd.xlane.f32.xlu1 %v415_v62 }
  0x46   : > { %419 = vadd.xlane.f32.xlu2 %v418_v63  ;;  %801 = vmatpush.msrb.mxu3 %v770_v30 }
  0x4b   : > { %1332 = vmatmul.msk.f32.vlgmr.msrb.gmra.mxu2 %vm375_vm0, %v1761_v2 }
  0x4d   : > { %422 = vadd.xlane.f32.xlu0 %v421_v11 }
  0x53   : > { %1333 = vmatmul.msk.f32.gmra.mxu2 %vm375_vm0, %v1779_v9 }
  0x5b   : > { %1334 = vmatmul.msk.f32.gmra.mxu2 %vm375_vm0, %v1766_v4 }
  0x63   : > { %1335 = vmatmul.msk.f32.gmra.mxu2 %vm375_vm0, %v1785_v12 }
  0x6b   : > { %1336 = vmatmul.msk.f32.gmra.mxu2 %vm375_vm0, %v1771_v6 }
  0x73   : > { %1337 = vmatmul.msk.f32.gmra.mxu2 %vm375_vm0, %v1796_v16 }
  0x7b   : > { %1338 = vmatmul.msk.f32.gmra.mxu2 %vm375_vm0, %v1816_v25 }
  0x83   : > { %1339 = vmatmul.msk.f32.gmra.mxu2 %vm375_vm0, %v1822_v28 }
  0x8b   : > { %1340 = vmatmul.msk.f32.gmra.mxu2 %vm375_vm0, %v1838_v34 }
  0x93   : > { %1341 = vmatmul.msk.f32.gmra.mxu2 %vm375_vm0, %v1791_v14 }
  0x98   : > { %v378_v2 = vpop.xlane.xlu0 %377  ;;  %v384_v4 = vpop.xlane.xlu1 %383 }
  0x99   : > { %v427_v33 = vmul.f32 %v1948_v31, %v378_v2  ;;  %v429_v12 = vmul.f32 %v1948_v31, %v384_v4  ;;  %v390_v49 = vpop.xlane.xlu2 %389 }
  0x9a   : > { %v431_v55 = vmul.f32 %v1948_v31, %v390_v49 }
  0x9b   : > { %1342 = vmatmul.msk.f32.gmra.mxu2 %vm375_vm0, %v1825_v29 }
  0x9f   : > { %v508_v36 = vpop.f32.mrf.mxu0 }
  0xa0   : > { %v509_v37 = vadd.f32 %v508_v36, %v427_v33  ;;  %v381_v38 = vpop.xlane.xlu0 %380  ;;  %v520_v47 = vpop.f32.mrf.mxu1 }
  0xa1   : > { %v428_v9 = vmul.f32 %v1948_v31, %v381_v38  ;;  %v387_v50 = vpop.xlane.xlu1 %386  ;;  %v521_v60 = vadd.f32 %v520_v47, %v431_v55  ;;  %v393_v61 = vpop.xlane.xlu2 %392 }
  0xa2   : > { %v557_v39 = vadd.f32 %v1951_v35, %v509_v37  ;;  %v430_v54 = vmul.f32 %v1948_v31, %v387_v50  ;;  %v432_v3 = vmul.f32 %v1948_v31, %v393_v61  ;;  %v879_v61 = vld [vmem:[%s2263_s4 + $0x60] sm:$0xff] }
  0xa3   : > { %v561_v1 = vadd.f32 %v1951_v35, %v521_v60  ;;  %1343 = vmatmul.msk.f32.gmra.mxu2 %vm375_vm0, %v1860_v44  ;;  %v881_v60 = vld [vmem:[%s2263_s4 + $0x70] sm:$0xff] }
  0xa4   : > { %v573_v40 = vmul.f32 1.442695, %v557_v39 }
  0xa5   : > { %v581_v25 = vmul.f32 1.442695, %v561_v1 }
  0xa6   : > { %1428 = vpow2.f32 %v573_v40  ;;  %v535_v33 = vpop.f32.mrf.mxu2 }
  0xa7   : > { %v511_v41 = vpop.f32.mrf.mxu0 }
  0xa8   : > { %v512_v42 = vadd.f32 %v511_v41, %v428_v9  ;;  %v523_v59 = vpop.f32.mrf.mxu1  ;;  %v396_v7 = vpop.xlane.xlu0 %395 }
  0xa9   : > { %v524_v5 = vadd.f32 %v523_v59, %v432_v3  ;;  %v433_v13 = vmul.f32 %v1948_v31, %v396_v7  ;;  %v399_v17 = vpop.xlane.xlu1 %398  ;;  %v402_v24 = vpop.xlane.xlu2 %401  ;;  %v878_v3 = vld [vmem:[%s2263_s4 + $0x58] sm:$0xff] }
  0xaa   : > { %v558_v43 = vadd.f32 %v1951_v35, %v512_v42  ;;  %v434_v22 = vmul.f32 %v1948_v31, %v399_v17  ;;  %v435_v30 = vmul.f32 %v1948_v31, %v402_v24  ;;  %v872_v24 = vld [vmem:[%s2263_s4 + $0x28] sm:$0xff] }
  0xab   : > { %v562_v11 = vadd.f32 %v1951_v35, %v524_v5  ;;  %1344 = vmatmul.msk.f32.gmra.mxu2 %vm375_vm0, %v1887_v56 }
  0xac   : > { %v1960_v45 = vpop.eup %1428  ;;  %v575_v46 = vmul.f32 1.442695, %v558_v43 }
  0xad   : > { %639 = vmatmul.f32.vlgmr.msrb.gmra.mxu1 %v1960_v45  ;;  %802 = vmatmul.f32.vlgmr.msrb.gmra.mxu3 %v1960_v45  ;;  %v583_v15 = vmul.f32 1.442695, %v562_v11  ;;  %v876_v11 = vld [vmem:[%s2263_s4 + $0x48] sm:$0xff] }
  0xae   : > { %1430 = vpow2.f32 %v575_v46  ;;  %v538_v9 = vpop.f32.mrf.mxu2 }
  0xaf   : > { %v514_v48 = vpop.f32.mrf.mxu0 }
  0xb0   : > { %v515_v6 = vadd.f32 %v514_v48, %v429_v12  ;;  %v526_v8 = vpop.f32.mrf.mxu1  ;;  %v405_v37 = vpop.xlane.xlu0 %404 }
  0xb1   : > { %v527_v28 = vadd.f32 %v526_v8, %v433_v13  ;;  %v436_v40 = vmul.f32 %v1948_v31, %v405_v37  ;;  %v408_v4 = vpop.xlane.xlu1 %407  ;;  %v411_v44 = vpop.xlane.xlu2 %410  ;;  %v877_v8 = vld [vmem:[%s2263_s4 + $0x50] sm:$0xff]  ;;  %v875_v13 = vld [vmem:[%s2263_s4 + $0x40] sm:$0xff] }
  0xb2   : > { %v559_v51 = vadd.f32 %v1951_v35, %v515_v6  ;;  %v437_v46 = vmul.f32 %v1948_v31, %v408_v4  ;;  %v438_v50 = vmul.f32 %v1948_v31, %v411_v44 }
  0xb3   : > { %v563_v21 = vadd.f32 %v1951_v35, %v527_v28  ;;  %v536_v29 = vadd.f32 %v535_v33, %v436_v40  ;;  %1345 = vmatmul.msk.f32.gmra.mxu2 %vm375_vm0, %v1892_v57  ;;  %v880_v57 = vld [vmem:[%s2263_s4 + $0x68] sm:$0xff] }
  0xb4   : > { %v1968_v52 = vpop.eup %1430  ;;  %v577_v53 = vmul.f32 1.442695, %v559_v51  ;;  %v539_v47 = vadd.f32 %v538_v9, %v437_v46  ;;  %v882_v51 = vld [vmem:[%s2263_s4 + $0x78] sm:$0xff]  ;;  %v869_v9 = vld [vmem:[%s2263_s4 + $0x10] sm:$0xff] }
  0xb5   : > { %642 = vmatmul.f32.gmra.mxu1 %v1968_v52  ;;  %805 = vmatmul.f32.gmra.mxu3 %v1968_v52  ;;  %v585_v23 = vmul.f32 1.442695, %v563_v21  ;;  %v566_v43 = vadd.f32 %v1951_v35, %v536_v29 }
  0xb6   : > { %1432 = vpow2.f32 %v577_v53  ;;  %v541_v48 = vpop.f32.mrf.mxu2  ;;  %v567_v6 = vadd.f32 %v1951_v35, %v539_v47  ;;  %883 = vmatpush.msrb.mxu0 %v882_v51 }
  0xb7   : > { %v517_v58 = vpop.f32.mrf.mxu0  ;;  %v591_v12 = vmul.f32 1.442695, %v566_v43  ;;  %v542_v53 = vadd.f32 %v541_v48, %v438_v50 }
  0xb8   : > { %v518_v16 = vadd.f32 %v517_v58, %v430_v54  ;;  %v529_v20 = vpop.f32.mrf.mxu1  ;;  %v593_v56 = vmul.f32 1.442695, %v567_v6  ;;  %v414_v54 = vpop.xlane.xlu0 %413  ;;  %884 = vmatpush.msrb.mxu0 %v881_v60 }
  0xb9   : > { %v530_v34 = vadd.f32 %v529_v20, %v434_v22  ;;  %v568_v59 = vadd.f32 %v1951_v35, %v542_v53  ;;  %v417_v1 = vpop.xlane.xlu1 %416  ;;  %v420_v17 = vpop.xlane.xlu2 %419  ;;  %v874_v20 = vld [vmem:[%s2263_s4 + $0x38] sm:$0xff] }
  0xba   : > { %v560_v62 = vadd.f32 %v1951_v35, %v518_v16  ;;  %v439_v16 = vmul.f32 %v1948_v31, %v414_v54  ;;  %885 = vmatpush.msrb.mxu0 %v880_v57  ;;  %v550_v22 = vpop.f32.mrf.mxu3 }
  0xbb   : > { %v564_v27 = vadd.f32 %v1951_v35, %v530_v34  ;;  %1346 = vmatmul.msk.f32.gmra.mxu2 %vm375_vm0, %v1803_v18  ;;  %v440_v18 = vmul.f32 %v1948_v31, %v417_v1  ;;  %v873_v34 = vld [vmem:[%s2263_s4 + $0x30] sm:$0xff] }
  0xbc   : > { %v1977_v63 = vpop.eup %1432  ;;  %v579_v0 = vmul.f32 1.442695, %v560_v62  ;;  %v595_v62 = vmul.f32 1.442695, %v568_v59  ;;  %886 = vmatpush.msrb.mxu0 %v879_v61 }
  0xbd   : > { %645 = vmatmul.f32.gmra.mxu1 %v1977_v63  ;;  %808 = vmatmul.f32.gmra.mxu3 %v1977_v63  ;;  %v587_v14 = vmul.f32 1.442695, %v564_v27  ;;  %v871_v27 = vld [vmem:[%s2263_s4 + $0x20] sm:$0xff] }
  0xbe   : > { %1434 = vpow2.f32 %v579_v0  ;;  %v544_v58 = vpop.f32.mrf.mxu2  ;;  %887 = vmatpush.msrb.mxu0 %v878_v3 }
  0xbf   : > { %1436 = vpow2.f32 %v581_v25  ;;  %v545_v0 = vadd.f32 %v544_v58, %v439_v16 }
  0xc0   : > { %1438 = vpow2.f32 %v583_v15  ;;  %v532_v2 = vpop.f32.mrf.mxu1  ;;  %888 = vmatpush.msrb.mxu0 %v877_v8  ;;  %v423_v33 = vpop.xlane.xlu0 %422 }
  0xc1   : > { %1440 = vpow2.f32 %v585_v23  ;;  %v533_v36 = vadd.f32 %v532_v2, %v435_v30  ;;  %v569_v5 = vadd.f32 %v1951_v35, %v545_v0 }
  0xc2   : > { %1442 = vpow2.f32 %v587_v14  ;;  %889 = vmatpush.msrb.mxu0 %v876_v11  ;;  %v553_v40 = vpop.f32.mrf.mxu3 }
  0xc3   : > { %v565_v39 = vadd.f32 %v1951_v35, %v533_v36  ;;  %1347 = vmatmul.msk.f32.gmra.mxu2 %vm375_vm0, %v1835_v32  ;;  %v597_v15 = vmul.f32 1.442695, %v569_v5  ;;  %v441_v32 = vmul.f32 %v1948_v31, %v420_v17  ;;  %v870_v36 = vld [vmem:[%s2263_s4 + $0x18] sm:$0xff] }
  0xc4   : > { %v1985_v10 = vpop.eup %1434  ;;  %890 = vmatpush.msrb.mxu0 %v875_v13 }
  0xc5   : > { %648 = vmatmul.f32.gmra.mxu1 %v1985_v10  ;;  %811 = vmatmul.f32.gmra.mxu3 %v1985_v10  ;;  %v1993_v19 = vpop.eup %1436  ;;  %v589_v41 = vmul.f32 1.442695, %v565_v39  ;;  %v551_v2 = vadd.f32 %v550_v22, %v441_v32  ;;  %v442_v39 = vmul.f32 %v1948_v31, %v423_v33  ;;  %v867_v31 = vld [vmem:[%s2263_s4] sm:$0xff] }
  0xc6   : > { %v2001_v26 = vpop.eup %1438  ;;  %v547_v7 = vpop.f32.mrf.mxu2  ;;  %891 = vmatpush.msrb.mxu0 %v874_v20 }
  0xc7   : > { %v2009_v38 = vpop.eup %1440  ;;  %1444 = vpow2.f32 %v589_v41  ;;  %v548_v28 = vadd.f32 %v547_v7, %v440_v18  ;;  %v571_v37 = vadd.f32 %v1951_v35, %v551_v2  ;;  %v868_v41 = vld [vmem:[%s2263_s4 + $0x8] sm:$0xff]  ;;  %v554_v4 = vadd.f32 %v553_v40, %v442_v39 }
  0xc8   : > { %v2017_v42 = vpop.eup %1442  ;;  %1446 = vpow2.f32 %v591_v12  ;;  %892 = vmatpush.msrb.mxu0 %v873_v34 }
  0xc9   : > { %1448 = vpow2.f32 %v593_v56  ;;  %v570_v23 = vadd.f32 %v1951_v35, %v548_v28  ;;  %v601_v29 = vmul.f32 1.442695, %v571_v37  ;;  %v572_v46 = vadd.f32 %v1951_v35, %v554_v4  ;;  %v2126_v28 = vld [vmem:[%s2266_s7 + $0x1] ss:$0 sm:$0xff]  ;;  %v2141_v4 = vld [vmem:[%s2266_s7] ss:$0 sm:$0xff] }
  0xca   : > { %1450 = vpow2.f32 %v595_v62  ;;  %893 = vmatpush.msrb.mxu0 %v872_v24 }
  0xcb   : > { %1452 = vpow2.f32 %v597_v15  ;;  %v599_v30 = vmul.f32 1.442695, %v570_v23  ;;  %v603_v12 = vmul.f32 1.442695, %v572_v46 }
  0xcc   : > { %894 = vmatpush.msrb.mxu0 %v871_v27 }
  0xcd   : > { %651 = vmatmul.f32.gmra.mxu1 %v1993_v19  ;;  %814 = vmatmul.f32.gmra.mxu3 %v1993_v19  ;;  %v2025_v49 = vpop.eup %1444  ;;  %1454 = vpow2.f32 %v599_v30 }
  0xce   : > { %v2036_v55 = vpop.eup %1446  ;;  %895 = vmatpush.msrb.mxu0 %v870_v36  ;;  %1456 = vpow2.f32 %v601_v29 }
  0xcf   : > { %v2056_v25 = vpop.eup %1448  ;;  %1458 = vpow2.f32 %v603_v12 }
  0xd0   : > { %v2076_v21 = vpop.eup %1450  ;;  %896 = vmatpush.msrb.mxu0 %v869_v9 }
  0xd1   : > { %v2091_v14 = vpop.eup %1452 }
  0xd2   : > { %897 = vmatpush.msrb.mxu0 %v868_v41 }
  0xd3   : > { %v1455_v43 = vpop.eup %1454 }
  0xd4   : > { %898 = vmatpush.msrb.mxu0 %v867_v31  ;;  %v1457_v47 = vpop.eup %1456 }
  0xd5   : > { %654 = vmatmul.f32.gmra.mxu1 %v2001_v26  ;;  %817 = vmatmul.f32.gmra.mxu3 %v2001_v26  ;;  %v1459_v44 = vpop.eup %1458 }
  0xdd   : > { %657 = vmatmul.f32.gmra.mxu1 %v2009_v38  ;;  %820 = vmatmul.f32.gmra.mxu3 %v2009_v38 }
  0xe5   : > { %660 = vmatmul.f32.gmra.mxu1 %v2017_v42  ;;  %823 = vmatmul.f32.gmra.mxu3 %v2017_v42 }
  0xed   : > { %663 = vmatmul.f32.gmra.mxu1 %v2025_v49  ;;  %826 = vmatmul.f32.gmra.mxu3 %v2025_v49 }
  0xf5   : > { %666 = vmatmul.f32.gmra.mxu1 %v2036_v55  ;;  %829 = vmatmul.f32.gmra.mxu3 %v2036_v55 }
  0xfd   : > { %669 = vmatmul.f32.gmra.mxu1 %v2056_v25  ;;  %832 = vmatmul.f32.gmra.mxu3 %v2056_v25 }
 0x105   : > { %672 = vmatmul.f32.gmra.mxu1 %v2076_v21  ;;  %835 = vmatmul.f32.gmra.mxu3 %v2076_v21 }
 0x10d   : > { %675 = vmatmul.f32.gmra.mxu1 %v2091_v14  ;;  %838 = vmatmul.f32.gmra.mxu3 %v2091_v14 }
 0x115   : > { %678 = vmatmul.f32.gmra.mxu1 %v1455_v43  ;;  %841 = vmatmul.f32.gmra.mxu3 %v1455_v43 }
 0x11d   : > { %681 = vmatmul.f32.gmra.mxu1 %v1457_v47  ;;  %844 = vmatmul.f32.gmra.mxu3 %v1457_v47 }
 0x125   : > { %684 = vmatmul.f32.gmra.mxu1 %v1459_v44  ;;  %847 = vmatmul.f32.gmra.mxu3 %v1459_v44 }
 0x12a   : > { %v640_v8 = vpop.f32.mrf.mxu1 }
 0x130   : > { %v803_v48 = vpop.f32.mrf.mxu3 }
 0x131   : > { %v851_v6 = vmul.f32 %v1960_v45, %v803_v48 }
 0x133   : > { %899 = vmatmul.f32.vlgmr.msrb.gmra.mxu0 %v851_v6 }
 0x138   : > { %v806_v50 = vpop.f32.mrf.mxu3 }
 0x139   : > { %v852_v51 = vmul.f32 %v1968_v52, %v806_v50 }
 0x13b   : > { %902 = vmatmul.f32.gmra.mxu0 %v852_v51 }
 0x140   : > { %v809_v56 = vpop.f32.mrf.mxu3 }
 0x141   : > { %v853_v35 = vmul.f32 %v1977_v63, %v809_v56 }
 0x143   : > { %905 = vmatmul.f32.gmra.mxu0 %v853_v35 }
 0x148   : > { %v812_v53 = vpop.f32.mrf.mxu3 }
 0x149   : > { %v854_v54 = vmul.f32 %v1985_v10, %v812_v53 }
 0x14b   : > { %908 = vmatmul.f32.gmra.mxu0 %v854_v54 }
 0x150   : > { %v815_v58 = vpop.f32.mrf.mxu3 }
 0x151   : > { %v855_v59 = vmul.f32 %v1993_v19, %v815_v58 }
 0x153   : > { %911 = vmatmul.f32.gmra.mxu0 %v855_v59 }
 0x158   : > { %v818_v16 = vpop.f32.mrf.mxu3 }
 0x159   : > { %v856_v45 = vmul.f32 %v2001_v26, %v818_v16 }
 0x15b   : > { %914 = vmatmul.f32.gmra.mxu0 %v856_v45 }
 0x160   : > { %v821_v60 = vpop.f32.mrf.mxu3 }
 0x161   : > { %v857_v52 = vmul.f32 %v2009_v38, %v821_v60 }
 0x163   : > { %917 = vmatmul.f32.gmra.mxu0 %v857_v52 }
 0x168   : > { %v824_v57 = vpop.f32.mrf.mxu3 }
 0x169   : > { %v858_v63 = vmul.f32 %v2017_v42, %v824_v57 }
 0x16b   : > { %920 = vmatmul.f32.gmra.mxu0 %v858_v63 }
 0x170   : > { %v827_v61 = vpop.f32.mrf.mxu3 }
 0x171   : > { %v859_v10 = vmul.f32 %v2025_v49, %v827_v61 }
 0x173   : > { %923 = vmatmul.f32.gmra.mxu0 %v859_v10 }
 0x178   : > { %v830_v62 = vpop.f32.mrf.mxu3 }
 0x179   : > { %v860_v19 = vmul.f32 %v2036_v55, %v830_v62  ;;  %v705_v55 = vpop.f32.mrf.mxu2 }
 0x17a   : > { %v706_v29 = vadd.f32 %v705_v55, %v640_v8 }
 0x17b   : > { %926 = vmatmul.f32.gmra.mxu0 %v860_v19 }
 0x180   : > { %v833_v0 = vpop.f32.mrf.mxu3 }
 0x181   : > { %v861_v26 = vmul.f32 %v2056_v25, %v833_v0  ;;  %v643_v25 = vpop.f32.mrf.mxu1  ;;  %v708_v15 = vpop.f32.mrf.mxu2 }
 0x182   : > { %v709_v45 = vadd.f32 %v708_v15, %v643_v25 }
 0x183   : > { %929 = vmatmul.f32.gmra.mxu0 %v861_v26 }
 0x184   : > { %v755_v10 = vadd.f32 %v2141_v4, %v709_v45 }
 0x188   : > { %v836_v1 = vpop.f32.mrf.mxu3 }
 0x189   : > { %v862_v38 = vmul.f32 %v2076_v21, %v836_v1  ;;  %v646_v22 = vpop.f32.mrf.mxu1  ;;  %v711_v23 = vpop.f32.mrf.mxu2 }
 0x18b   : > { %932 = vmatmul.f32.gmra.mxu0 %v862_v38 }
 0x190   : > { %v839_v3 = vpop.f32.mrf.mxu3 }
 0x191   : > { %v863_v42 = vmul.f32 %v2091_v14, %v839_v3  ;;  %v2130_v36 = vpop.f32.mrf.mxu1  ;;  %v2132_v37 = vpop.f32.mrf.mxu2 }
 0x193   : > { %935 = vmatmul.f32.gmra.mxu0 %v863_v42 }
 0x198   : > { %v842_v5 = vpop.f32.mrf.mxu3 }
 0x199   : > { %v864_v18 = vmul.f32 %v1455_v43, %v842_v5  ;;  %v2148_v58 = vpop.f32.mrf.mxu1  ;;  %v2150_v59 = vpop.f32.mrf.mxu2 }
 0x19b   : > { %938 = vmatmul.f32.gmra.mxu0 %v864_v18  ;;  %v712_v18 = vadd.f32 %v711_v23, %v646_v22 }
 0x19d   : > { %v756_v15 = vadd.f32 %v2141_v4, %v712_v18 }
 0x1a0   : > { %v845_v49 = vpop.f32.mrf.mxu3 }
 0x1a1   : > { %v865_v7 = vmul.f32 %v1457_v47, %v845_v49  ;;  %v655_v8 = vpop.f32.mrf.mxu1  ;;  %v720_v55 = vpop.f32.mrf.mxu2 }
 0x1a3   : > { %941 = vmatmul.f32.gmra.mxu0 %v865_v7 }
 0x1a8   : > { %v848_v11 = vpop.f32.mrf.mxu3 }
 0x1a9   : > { %v866_v13 = vmul.f32 %v1459_v44, %v848_v11  ;;  %v754_v44 = vadd.f32 %v2141_v4, %v706_v29 }
 0x1ab   : > { %944 = vmatmul.f32.gmra.mxu0 %v866_v13 }
 0x1b0   : > { %v900_v17 = vpop.f32.mrf.mxu0 }
 0x1b1   : > { %v949_v20 = vsub.f32 %v2126_v28, %v900_v17 }
 0x1b3   : > { %v965_v21 = vmax.f32 %v949_v20, 0.0 }
 0x1b5   : > { %1460 = vrsqrt.f32 %v965_v21  ;;  %vm988_vm1 = vcmp.eq.f32.partialorder %v965_v21, inf  ;;  %v991_v47 = vand.u32 2147483648, %v965_v21  ;;  %vm990_vm2 = vcmp.eq.f32.partialorder %v965_v21, 0.0 }
 0x1b8   : > { %v903_v32 = vpop.f32.mrf.mxu0 }
 0x1b9   : > { %v950_v34 = vsub.f32 %v2126_v28, %v903_v32 }
 0x1bb   : > { %v1461_v24 = vpop.eup %1460  ;;  %v966_v27 = vmax.f32 %v950_v34, 0.0 }
 0x1bc   : > { %v982_v30 = vmul.f32 %v1461_v24, %v965_v21 }
 0x1bd   : > { %1462 = vrsqrt.f32 %v966_v27  ;;  %vm1000_vm3 = vcmp.eq.f32.partialorder %v966_v27, inf  ;;  %v1003_v61 = vand.u32 2147483648, %v966_v27  ;;  %vm1002_vm4 = vcmp.eq.f32.partialorder %v966_v27, 0.0 }
 0x1be   : > { %v983_v2 = vmul.f32 %v1461_v24, %v982_v30  ;;  %v715_v30 = vadd.f32 %v2132_v37, %v2130_v36 }
 0x1c0   : > { %v984_v33 = vmul.f32 0.5, %v983_v2  ;;  %v906_v14 = vpop.f32.mrf.mxu0  ;;  %v757_v29 = vadd.f32 %v2141_v4, %v715_v30 }
 0x1c1   : > { %v951_v39 = vsub.f32 %v2126_v28, %v906_v14 }
 0x1c2   : > { %v985_v40 = vsub.f32 1.5, %v984_v33 }
 0x1c3   : > { %v1463_v9 = vpop.eup %1462  ;;  %v2136_v41 = vmax.f32 %v951_v39, 0.0 }
 0x1c4   : > { %v986_v31 = vmul.f32 %v1461_v24, %v985_v40  ;;  %v994_v43 = vmul.f32 %v1463_v9, %v966_v27  ;;  %v658_v40 = vpop.f32.mrf.mxu1 }
 0x1c5   : > { %1464 = vrsqrt.f32 %v2136_v41  ;;  %vm1012_vm5 = vcmp.eq.f32.partialorder %v2136_v41, inf  ;;  %v1015_v25 = vand.u32 2147483648, %v2136_v41  ;;  %vm1014_vm6 = vcmp.eq.f32.partialorder %v2136_v41, 0.0 }
 0x1c6   : > { %v987_v46 = vmul.f32 %v986_v31, %v965_v21  ;;  %v995_v12 = vmul.f32 %v1463_v9, %v994_v43 }
 0x1c8   : > { %v989_v48 = vsel %vm988_vm1, %v965_v21, %v987_v46  ;;  %v996_v6 = vmul.f32 0.5, %v995_v12  ;;  %v909_v50 = vpop.f32.mrf.mxu0 }
 0x1c9   : > { %v992_v51 = vsel %vm990_vm2, %v991_v47, %v989_v48  ;;  %v952_v56 = vsub.f32 %v2126_v28, %v909_v50 }
 0x1ca   : > { %v1173_v35 = vadd.f32 %v992_v51, %v754_v44  ;;  %v997_v53 = vsub.f32 1.5, %v996_v6  ;;  %v718_v6 = vadd.f32 %v2150_v59, %v2148_v58 }
 0x1cb   : > { %v1465_v54 = vpop.eup %1464  ;;  %v968_v16 = vmax.f32 %v952_v56, 0.0 }
 0x1cc   : > { %1189 = vst [vmem:[%s2152_s23] sm:$0xff] %v1173_v35  ;;  %v998_v60 = vmul.f32 %v1463_v9, %v997_v53  ;;  %v1006_v52 = vmul.f32 %v1465_v54, %v2136_v41  ;;  %v723_v9 = vpop.f32.mrf.mxu2  ;;  %v661_v59 = vpop.f32.mrf.mxu1 }
 0x1cd   : > { %1466 = vrsqrt.f32 %v968_v16  ;;  %vm1024_vm7 = vcmp.eq.f32.partialorder %v968_v16, inf  ;;  %vm1026_vm8 = vcmp.eq.f32.partialorder %v968_v16, 0.0 }
 0x1ce   : > { %v999_v57 = vmul.f32 %v998_v60, %v966_v27  ;;  %v1007_v63 = vmul.f32 %v1465_v54, %v1006_v52 }
 0x1d0   : > { %v1001_v62 = vsel %vm1000_vm3, %v966_v27, %v999_v57  ;;  %v1008_v19 = vmul.f32 0.5, %v1007_v63  ;;  %v912_v0 = vpop.f32.mrf.mxu0 }
 0x1d1   : > { %v1004_v26 = vsel %vm1002_vm4, %v1003_v61, %v1001_v62  ;;  %v953_v1 = vsub.f32 %v2126_v28, %v912_v0 }
 0x1d2   : > { %v1174_v38 = vadd.f32 %v1004_v26, %v755_v10  ;;  %v1009_v3 = vsub.f32 1.5, %v1008_v19  ;;  %v721_v19 = vadd.f32 %v720_v55, %v655_v8 }
 0x1d3   : > { %v1467_v42 = vpop.eup %1466  ;;  %v2158_v5 = vmax.f32 %v953_v1, 0.0 }
 0x1d4   : > { %1190 = vst [vmem:[%s2152_s23 + $0x8] sm:$0xff] %v1174_v38  ;;  %v1010_v49 = vmul.f32 %v1465_v54, %v1009_v3  ;;  %v1018_v7 = vmul.f32 %v1467_v42, %v968_v16  ;;  %v758_v54 = vadd.f32 %v2141_v4, %v718_v6  ;;  %v726_v60 = vpop.f32.mrf.mxu2 }
 0x1d5   : > { %1468 = vrsqrt.f32 %v2158_v5  ;;  %vm1036_vm9 = vcmp.eq.f32.partialorder %v2158_v5, inf  ;;  %v1039_v53 = vand.u32 2147483648, %v2158_v5  ;;  %vm1038_vm10 = vcmp.eq.f32.partialorder %v2158_v5, 0.0 }
 0x1d6   : > { %v1011_v11 = vmul.f32 %v1010_v49, %v2136_v41  ;;  %v1019_v13 = vmul.f32 %v1467_v42, %v1018_v7 }
 0x1d8   : > { %v1013_v17 = vsel %vm1012_vm5, %v2136_v41, %v1011_v11  ;;  %v1020_v20 = vmul.f32 0.5, %v1019_v13  ;;  %v915_v21 = vpop.f32.mrf.mxu0  ;;  %v1027_v41 = vand.u32 2147483648, %v968_v16 }
 0x1d9   : > { %v1016_v22 = vsel %vm1014_vm6, %v1015_v25, %v1013_v17  ;;  %v954_v23 = vsub.f32 %v2126_v28, %v915_v21  ;;  %v664_v25 = vpop.f32.mrf.mxu1 }
 0x1da   : > { %v1175_v32 = vadd.f32 %v1016_v22, %v756_v15  ;;  %v1021_v34 = vsub.f32 1.5, %v1020_v20  ;;  %v724_v20 = vadd.f32 %v723_v9, %v658_v40 }
 0x1db   : > { %v1469_v24 = vpop.eup %1468  ;;  %v970_v27 = vmax.f32 %v954_v23, 0.0 }
 0x1dc   : > { %1191 = vst [vmem:[%s2152_s23 + $0x10] sm:$0xff] %v1175_v32  ;;  %v1022_v2 = vmul.f32 %v1467_v42, %v1021_v34  ;;  %v1030_v33 = vmul.f32 %v1469_v24, %v2158_v5  ;;  %v759_v42 = vadd.f32 %v2141_v4, %v721_v19  ;;  %v729_v15 = vpop.f32.mrf.mxu2 }
 0x1dd   : > { %1470 = vrsqrt.f32 %v970_v27  ;;  %vm1048_vm11 = vcmp.eq.f32.partialorder %v970_v27, inf  ;;  %v1051_v3 = vand.u32 2147483648, %v970_v27  ;;  %vm1050_vm12 = vcmp.eq.f32.partialorder %v970_v27, 0.0 }
 0x1de   : > { %v1023_v14 = vmul.f32 %v1022_v2, %v968_v16  ;;  %v1031_v39 = vmul.f32 %v1469_v24, %v1030_v33 }
 0x1e0   : > { %v1025_v31 = vsel %vm1024_vm7, %v968_v16, %v1023_v14  ;;  %v1032_v43 = vmul.f32 0.5, %v1031_v39  ;;  %v918_v46 = vpop.f32.mrf.mxu0 }
 0x1e1   : > { %v1028_v12 = vsel %vm1026_vm8, %v1027_v41, %v1025_v31  ;;  %v955_v36 = vsub.f32 %v2126_v28, %v918_v46  ;;  %v667_v46 = vpop.f32.mrf.mxu1 }
 0x1e2   : > { %v1176_v37 = vadd.f32 %v1028_v12, %v757_v29  ;;  %v1033_v47 = vsub.f32 1.5, %v1032_v43  ;;  %v727_v29 = vadd.f32 %v726_v60, %v661_v59 }
 0x1e3   : > { %v1471_v44 = vpop.eup %1470  ;;  %v971_v48 = vmax.f32 %v955_v36, 0.0 }
 0x1e4   : > { %1192 = vst [vmem:[%s2152_s23 + $0x18] sm:$0xff] %v1176_v37  ;;  %v1034_v50 = vmul.f32 %v1469_v24, %v1033_v47  ;;  %v1042_v51 = vmul.f32 %v1471_v44, %v970_v27  ;;  %v760_v24 = vadd.f32 %v2141_v4, %v724_v20  ;;  %v732_v12 = vpop.f32.mrf.mxu2 }
 0x1e5   : > { %1472 = vrsqrt.f32 %v971_v48  ;;  %vm1060_vm13 = vcmp.eq.f32.partialorder %v971_v48, inf  ;;  %v1063_v34 = vand.u32 2147483648, %v971_v48  ;;  %vm1062_vm14 = vcmp.eq.f32.partialorder %v971_v48, 0.0 }
 0x1e6   : > { %v1035_v56 = vmul.f32 %v1034_v50, %v2158_v5  ;;  %v1043_v35 = vmul.f32 %v1471_v44, %v1042_v51 }
 0x1e8   : > { %v1037_v16 = vsel %vm1036_vm9, %v2158_v5, %v1035_v56  ;;  %v1044_v45 = vmul.f32 0.5, %v1043_v35  ;;  %v921_v58 = vpop.f32.mrf.mxu0 }
 0x1e9   : > { %v1040_v52 = vsel %vm1038_vm10, %v1039_v53, %v1037_v16  ;;  %v956_v57 = vsub.f32 %v2126_v28, %v921_v58 }
 0x1ea   : > { %v1177_v63 = vadd.f32 %v1040_v52, %v758_v54  ;;  %v1045_v61 = vsub.f32 1.5, %v1044_v45  ;;  %v730_v45 = vadd.f32 %v729_v15, %v664_v25 }
 0x1eb   : > { %v1473_v10 = vpop.eup %1472  ;;  %v972_v62 = vmax.f32 %v956_v57, 0.0  ;;  %v670_v57 = vpop.f32.mrf.mxu1 }
 0x1ec   : > { %1193 = vst [vmem:[%s2152_s23 + $0x20] sm:$0xff] %v1177_v63  ;;  %v1046_v0 = vmul.f32 %v1471_v44, %v1045_v61  ;;  %v1054_v26 = vmul.f32 %v1473_v10, %v971_v48  ;;  %v761_v44 = vadd.f32 %v2141_v4, %v727_v29  ;;  %v735_v63 = vpop.f32.mrf.mxu2 }
 0x1ed   : > { %1474 = vrsqrt.f32 %v972_v62  ;;  %vm1072_vm15 = vcmp.eq.f32.partialorder %v972_v62, inf  ;;  %v1075_v47 = vand.u32 2147483648, %v972_v62  ;;  %vm1074_vm0 = vcmp.eq.f32.partialorder %v972_v62, 0.0 }
 0x1ee   : > { %v1047_v1 = vmul.f32 %v1046_v0, %v970_v27  ;;  %v1055_v38 = vmul.f32 %v1473_v10, %v1054_v26 }
 0x1f0   : > { %v1049_v5 = vsel %vm1048_vm11, %v970_v27, %v1047_v1  ;;  %v1056_v18 = vmul.f32 0.5, %v1055_v38  ;;  %v924_v49 = vpop.f32.mrf.mxu0 }
 0x1f1   : > { %v1052_v7 = vsel %vm1050_vm12, %v1051_v3, %v1049_v5  ;;  %v957_v11 = vsub.f32 %v2126_v28, %v924_v49 }
 0x1f2   : > { %v1178_v13 = vadd.f32 %v1052_v7, %v759_v42  ;;  %v1057_v8 = vsub.f32 1.5, %v1056_v18  ;;  %v733_v18 = vadd.f32 %v732_v12, %v667_v46 }
 0x1f3   : > { %v1475_v55 = vpop.eup %1474  ;;  %v973_v17 = vmax.f32 %v957_v11, 0.0  ;;  %v673_v20 = vpop.f32.mrf.mxu1 }
 0x1f4   : > { %1194 = vst [vmem:[%s2152_s23 + $0x28] sm:$0xff] %v1178_v13  ;;  %v1058_v21 = vmul.f32 %v1473_v10, %v1057_v8  ;;  %v1066_v22 = vmul.f32 %v1475_v55, %v972_v62  ;;  %v762_v10 = vadd.f32 %v2141_v4, %v730_v45 }
 0x1f5   : > { %1476 = vrsqrt.f32 %v973_v17  ;;  %vm1084_vm1 = vcmp.eq.f32.partialorder %v973_v17, inf  ;;  %v1087_v61 = vand.u32 2147483648, %v973_v17  ;;  %vm1086_vm2 = vcmp.eq.f32.partialorder %v973_v17, 0.0 }
 0x1f6   : > { %v1059_v23 = vmul.f32 %v1058_v21, %v971_v48  ;;  %v1067_v32 = vmul.f32 %v1475_v55, %v1066_v22  ;;  %v738_v21 = vpop.f32.mrf.mxu2 }
 0x1f8   : > { %v1061_v27 = vsel %vm1060_vm13, %v971_v48, %v1059_v23  ;;  %v1068_v30 = vmul.f32 0.5, %v1067_v32  ;;  %v927_v2 = vpop.f32.mrf.mxu0 }
 0x1f9   : > { %v1064_v33 = vsel %vm1062_vm14, %v1063_v34, %v1061_v27  ;;  %v958_v14 = vsub.f32 %v2126_v28, %v927_v2 }
 0x1fa   : > { %v1179_v39 = vadd.f32 %v1064_v33, %v760_v24  ;;  %v1069_v40 = vsub.f32 1.5, %v1068_v30  ;;  %v736_v30 = vadd.f32 %v735_v63, %v670_v57 }
 0x1fb   : > { %v1477_v9 = vpop.eup %1476  ;;  %v2191_v41 = vmax.f32 %v958_v14, 0.0 }
 0x1fc   : > { %1195 = vst [vmem:[%s2152_s23 + $0x30] sm:$0xff] %v1179_v39  ;;  %v1070_v31 = vmul.f32 %v1475_v55, %v1069_v40  ;;  %v1078_v43 = vmul.f32 %v1477_v9, %v973_v17  ;;  %v763_v55 = vadd.f32 %v2141_v4, %v733_v18 }
 0x1fd   : > { %1478 = vrsqrt.f32 %v2191_v41  ;;  %vm1096_vm3 = vcmp.eq.f32.partialorder %v2191_v41, inf  ;;  %v1099_v8 = vand.u32 2147483648, %v2191_v41  ;;  %vm1098_vm4 = vcmp.eq.f32.partialorder %v2191_v41, 0.0 }
 0x1fe   : > { %v1071_v36 = vmul.f32 %v1070_v31, %v972_v62  ;;  %v1079_v37 = vmul.f32 %v1477_v9, %v1078_v43 }
 0x200   : > { %v1073_v48 = vsel %vm1072_vm15, %v972_v62, %v1071_v36  ;;  %v1080_v6 = vmul.f32 0.5, %v1079_v37  ;;  %v930_v50 = vpop.f32.mrf.mxu0 }
 0x201   : > { %v1076_v51 = vsel %vm1074_vm0, %v1075_v47, %v1073_v48  ;;  %v959_v56 = vsub.f32 %v2126_v28, %v930_v50  ;;  %v676_v47 = vpop.f32.mrf.mxu1 }
 0x202   : > { %v1180_v35 = vadd.f32 %v1076_v51, %v761_v44  ;;  %v1081_v53 = vsub.f32 1.5, %v1080_v6  ;;  %v741_v44 = vpop.f32.mrf.mxu2  ;;  %v739_v6 = vadd.f32 %v738_v21, %v673_v20 }
 0x203   : > { %v1479_v54 = vpop.eup %1478  ;;  %v975_v16 = vmax.f32 %v959_v56, 0.0 }
 0x204   : > { %1196 = vst [vmem:[%s2152_s23 + $0x38] sm:$0xff] %v1180_v35  ;;  %v1082_v58 = vmul.f32 %v1477_v9, %v1081_v53  ;;  %v1090_v59 = vmul.f32 %v1479_v54, %v2191_v41  ;;  %v764_v9 = vadd.f32 %v2141_v4, %v736_v30 }
 0x205   : > { %1480 = vrsqrt.f32 %v975_v16  ;;  %vm1108_vm5 = vcmp.eq.f32.partialorder %v975_v16, inf  ;;  %v1111_v40 = vand.u32 2147483648, %v975_v16  ;;  %vm1110_vm6 = vcmp.eq.f32.partialorder %v975_v16, 0.0 }
 0x206   : > { %v1083_v60 = vmul.f32 %v1082_v58, %v973_v17  ;;  %v1091_v52 = vmul.f32 %v1479_v54, %v1090_v59 }
 0x208   : > { %v1085_v62 = vsel %vm1084_vm1, %v973_v17, %v1083_v60  ;;  %v1092_v19 = vmul.f32 0.5, %v1091_v52  ;;  %v933_v0 = vpop.f32.mrf.mxu0 }
 0x209   : > { %v1088_v26 = vsel %vm1086_vm2, %v1087_v61, %v1085_v62  ;;  %v960_v1 = vsub.f32 %v2126_v28, %v933_v0  ;;  %v679_v0 = vpop.f32.mrf.mxu1 }
 0x20a   : > { %v1181_v38 = vadd.f32 %v1088_v26, %v762_v10  ;;  %v1093_v3 = vsub.f32 1.5, %v1092_v19  ;;  %v742_v10 = vadd.f32 %v741_v44, %v676_v47  ;;  %v744_v26 = vpop.f32.mrf.mxu2 }
 0x20b   : > { %v1481_v42 = vpop.eup %1480  ;;  %v976_v5 = vmax.f32 %v960_v1, 0.0 }
 0x20c   : > { %1197 = vst [vmem:[%s2152_s23 + $0x40] sm:$0xff] %v1181_v38  ;;  %v1094_v49 = vmul.f32 %v1479_v54, %v1093_v3  ;;  %v1102_v7 = vmul.f32 %v1481_v42, %v975_v16  ;;  %v765_v54 = vadd.f32 %v2141_v4, %v739_v6 }
 0x20d   : > { %1482 = vrsqrt.f32 %v976_v5  ;;  %vm1120_vm7 = vcmp.eq.f32.partialorder %v976_v5, inf  ;;  %v1123_v53 = vand.u32 2147483648, %v976_v5  ;;  %vm1122_vm8 = vcmp.eq.f32.partialorder %v976_v5, 0.0 }
 0x20e   : > { %v1095_v11 = vmul.f32 %v1094_v49, %v2191_v41  ;;  %v1103_v13 = vmul.f32 %v1481_v42, %v1102_v7 }
 0x210   : > { %v1097_v25 = vsel %vm1096_vm3, %v2191_v41, %v1095_v11  ;;  %v1104_v15 = vmul.f32 0.5, %v1103_v13  ;;  %v936_v17 = vpop.f32.mrf.mxu0 }
 0x211   : > { %v1100_v22 = vsel %vm1098_vm4, %v1099_v8, %v1097_v25  ;;  %v961_v23 = vsub.f32 %v2126_v28, %v936_v17 }
 0x212   : > { %v1182_v32 = vadd.f32 %v1100_v22, %v763_v55  ;;  %v1105_v34 = vsub.f32 1.5, %v1104_v15  ;;  %v745_v15 = vadd.f32 %v744_v26, %v679_v0 }
 0x213   : > { %v1483_v24 = vpop.eup %1482  ;;  %v977_v27 = vmax.f32 %v961_v23, 0.0  ;;  %v682_v23 = vpop.f32.mrf.mxu1 }
 0x214   : > { %1198 = vst [vmem:[%s2152_s23 + $0x48] sm:$0xff] %v1182_v32  ;;  %v1106_v2 = vmul.f32 %v1481_v42, %v1105_v34  ;;  %v1114_v33 = vmul.f32 %v1483_v24, %v976_v5  ;;  %v766_v42 = vadd.f32 %v2141_v4, %v742_v10  ;;  %v747_v32 = vpop.f32.mrf.mxu2 }
 0x215   : > { %1484 = vrsqrt.f32 %v977_v27  ;;  %vm1132_vm9 = vcmp.eq.f32.partialorder %v977_v27, inf  ;;  %v1135_v3 = vand.u32 2147483648, %v977_v27  ;;  %vm1134_vm10 = vcmp.eq.f32.partialorder %v977_v27, 0.0 }
 0x216   : > { %v1107_v14 = vmul.f32 %v1106_v2, %v975_v16  ;;  %v1115_v39 = vmul.f32 %v1483_v24, %v1114_v33 }
 0x218   : > { %v1109_v41 = vsel %vm1108_vm5, %v975_v16, %v1107_v14  ;;  %v1116_v29 = vmul.f32 0.5, %v1115_v39  ;;  %v939_v31 = vpop.f32.mrf.mxu0  ;;  %v748_v39 = vadd.f32 %v747_v32, %v682_v23 }
 0x219   : > { %v1112_v43 = vsel %vm1110_vm6, %v1111_v40, %v1109_v41  ;;  %v962_v46 = vsub.f32 %v2126_v28, %v939_v31 }
 0x21a   : > { %v1183_v12 = vadd.f32 %v1112_v43, %v764_v9  ;;  %v1117_v36 = vsub.f32 1.5, %v1116_v29  ;;  %v768_v43 = vadd.f32 %v2141_v4, %v748_v39 }
 0x21b   : > { %v1485_v37 = vpop.eup %1484  ;;  %v978_v48 = vmax.f32 %v962_v46, 0.0 }
 0x21c   : > { %1199 = vst [vmem:[%s2152_s23 + $0x50] sm:$0xff] %v1183_v12  ;;  %v1118_v50 = vmul.f32 %v1483_v24, %v1117_v36  ;;  %v1126_v51 = vmul.f32 %v1485_v37, %v977_v27  ;;  %v767_v24 = vadd.f32 %v2141_v4, %v745_v15  ;;  %v685_v36 = vpop.f32.mrf.mxu1 }
 0x21d   : > { %1486 = vrsqrt.f32 %v978_v48  ;;  %vm1144_vm11 = vcmp.eq.f32.partialorder %v978_v48, inf  ;;  %v1147_v34 = vand.u32 2147483648, %v978_v48  ;;  %vm1146_vm12 = vcmp.eq.f32.partialorder %v978_v48, 0.0 }
 0x21e   : > { %v1119_v56 = vmul.f32 %v1118_v50, %v976_v5  ;;  %v1127_v35 = vmul.f32 %v1485_v37, %v1126_v51 }
 0x220   : > { %v1121_v16 = vsel %vm1120_vm7, %v976_v5, %v1119_v56  ;;  %v1128_v45 = vmul.f32 0.5, %v1127_v35  ;;  %v942_v58 = vpop.f32.mrf.mxu0 }
 0x221   : > { %v1124_v59 = vsel %vm1122_vm8, %v1123_v53, %v1121_v16  ;;  %v963_v60 = vsub.f32 %v2126_v28, %v942_v58 }
 0x222   : > { %v1184_v52 = vadd.f32 %v1124_v59, %v765_v54  ;;  %v1129_v57 = vsub.f32 1.5, %v1128_v45 }
 0x223   : > { %v1487_v63 = vpop.eup %1486  ;;  %v979_v61 = vmax.f32 %v963_v60, 0.0 }
 0x224   : > { %1200 = vst [vmem:[%s2152_s23 + $0x58] sm:$0xff] %v1184_v52  ;;  %v1130_v62 = vmul.f32 %v1485_v37, %v1129_v57  ;;  %v1138_v19 = vmul.f32 %v1487_v63, %v978_v48  ;;  %v750_v37 = vpop.f32.mrf.mxu2 }
 0x225   : > { %1488 = vrsqrt.f32 %v979_v61  ;;  %vm1156_vm13 = vcmp.eq.f32.partialorder %v979_v61, inf  ;;  %v1159_v31 = vand.u32 2147483648, %v979_v61  ;;  %vm1158_vm14 = vcmp.eq.f32.partialorder %v979_v61, 0.0 }
 0x226   : > { %v1131_v1 = vmul.f32 %v1130_v62, %v977_v27  ;;  %v1139_v38 = vmul.f32 %v1487_v63, %v1138_v19  ;;  %v751_v6 = vadd.f32 %v750_v37, %v685_v36 }
 0x228   : > { %v1133_v5 = vsel %vm1132_vm9, %v977_v27, %v1131_v1  ;;  %v1140_v18 = vmul.f32 0.5, %v1139_v38  ;;  %v945_v49 = vpop.f32.mrf.mxu0  ;;  %v769_v35 = vadd.f32 %v2141_v4, %v751_v6 }
 0x229   : > { %v1136_v7 = vsel %vm1134_vm10, %v1135_v3, %v1133_v5  ;;  %v964_v11 = vsub.f32 %v2126_v28, %v945_v49 }
 0x22a   : > { %v1185_v13 = vadd.f32 %v1136_v7, %v766_v42  ;;  %v1141_v8 = vsub.f32 1.5, %v1140_v18 }
 0x22b   : > { %v1489_v55 = vpop.eup %1488  ;;  %v980_v25 = vmax.f32 %v964_v11, 0.0 }
 0x22c   : > { %1201 = vst [vmem:[%s2152_s23 + $0x60] sm:$0xff] %v1185_v13  ;;  %v1142_v17 = vmul.f32 %v1487_v63, %v1141_v8  ;;  %v1150_v20 = vmul.f32 %v1489_v55, %v979_v61 }
 0x22d   : > { %1490 = vrsqrt.f32 %v980_v25  ;;  %vm1168_vm15 = vcmp.eq.f32.partialorder %v980_v25, inf  ;;  %v1171_v56 = vand.u32 2147483648, %v980_v25  ;;  %vm1170_vm0 = vcmp.eq.f32.partialorder %v980_v25, 0.0 }
 0x22e   : > { %v1143_v21 = vmul.f32 %v1142_v17, %v978_v48  ;;  %v1151_v22 = vmul.f32 %v1489_v55, %v1150_v20 }
 0x230   : > { %v1145_v27 = vsel %vm1144_vm11, %v978_v48, %v1143_v21  ;;  %v1152_v28 = vmul.f32 0.5, %v1151_v22 }
 0x231   : > { %v1148_v30 = vsel %vm1146_vm12, %v1147_v34, %v1145_v27 }
 0x232   : > { %v1186_v2 = vadd.f32 %v1148_v30, %v767_v24  ;;  %v1153_v33 = vsub.f32 1.5, %v1152_v28 }
 0x233   : > { %v1491_v14 = vpop.eup %1490 }
 0x234   : > { %1202 = vst [vmem:[%s2152_s23 + $0x68] sm:$0xff] %v1186_v2  ;;  %v1154_v40 = vmul.f32 %v1489_v55, %v1153_v33  ;;  %v1162_v9 = vmul.f32 %v1491_v14, %v980_v25 }
 0x236   : > { %v1155_v41 = vmul.f32 %v1154_v40, %v979_v61  ;;  %v1163_v29 = vmul.f32 %v1491_v14, %v1162_v9 }
 0x238   : > { %v1157_v46 = vsel %vm1156_vm13, %v979_v61, %v1155_v41  ;;  %v1164_v12 = vmul.f32 0.5, %v1163_v29 }
 0x239   : > { %v1160_v47 = vsel %vm1158_vm14, %v1159_v31, %v1157_v46 }
 0x23a   : > { %v1187_v44 = vadd.f32 %v1160_v47, %v768_v43  ;;  %v1165_v48 = vsub.f32 1.5, %v1164_v12 }
 0x23c   : > { %1203 = vst [vmem:[%s2152_s23 + $0x70] sm:$0xff] %v1187_v44  ;;  %v1166_v50 = vmul.f32 %v1491_v14, %v1165_v48 }
 0x23e   : > { %v1167_v51 = vmul.f32 %v1166_v50, %v980_v25 }
 0x240   : > { %v1169_v53 = vsel %vm1168_vm15, %v980_v25, %v1167_v51 }
 0x241   : > { %v1172_v54 = vsel %vm1170_vm0, %v1171_v56, %v1169_v53 }
 0x242   : > { %v1188_v16 = vadd.f32 %v1172_v54, %v769_v35 }
 0x244   : > { %1204 = vst [vmem:[%s2152_s23 + $0x78] sm:$0xff] %v1188_v16 }
 0x245   : > { %1579 = shalt.err (!%p1576_p8)
}
 0x246   : > { %s1628_s19 = smov 128   ;;  %s1629_s23 = smov 8  }
 0x247   : > { %1368 = dma.vmem_to_hbm [thread:$0]  (%p1713_p5), %s1219_s12, 2048, %s1221_s13, %s1206_s9, %s1628_s19, %s1628_s19, %s1629_s23  }
 0x248 PF: > { %p1385_p9 = scmp.ge.s32.totalorder %s1622_s30, 2  ;;  %s1235_s26 = sand.u32 1, %s1610_s27  }
 0x249   : > { %s1236_s10 = scalar_lea.sflag [#allocation4], %s1235_s26 }
 0x24a   : > { %p1378_p10 = pnand %p1385_p9, %p1717_p6 }
 0x24c   : > { %p1379_p11 = pneg %p1378_p10 }
 0x24e   : > { %1605 = dma.done.wait (%p1379_p11), %s1236_s10, 2048  }
 0x24f   : > { %1607 = vsyncadd (%p1379_p11), %s1236_s10, 4294965248  ;;  %p20_p12 = scmp.ge.s32.totalorder %s1700_s11, 4   ;;  %s2271_s27 = smov %s1614_s28 }
 0x250   : > { %s2272_s28 = smov %s1618_s29  ;;  %s2273_s29 = smov %s1711_s14 }
 0x251   : > { %s2274_s30 = smov %s1700_s11  ;;  %22 = sbr.rel (!%p20_p12) target bundleno = 5 (0x5), region = 96 }
 0x256   :  { %1242 = vsyncpa [#allocation3], 1 }
 0x257   :  { %1244 = vsyncpa [#allocation3 + $0x1], 1 }
 0x258   :  { %1245 = vsyncpa [#allocation6], 1 }
 0x259   :  { %1246 = vsyncpa [#allocation4], 1 }
 0x25a   :  { %1248 = vsyncpa [#allocation4 + $0x1], 1 }

</bundles_post_ra>
